<compile_context>
chip_gen: v6e
topology: v6e:2x2x1
jax: 0.10.0
libtpu: 0.0.40
codegen_flags: <defaults>
</compile_context>

<pallas_src>
import functools

import jax
import jax.numpy as jnp
import numpy as np
from jax.experimental import pallas as pl
from jax.experimental.pallas import tpu as pltpu


def _round_up(a, b):
    return (a + b - 1) // b * b


# ---------------------------------------------------------------------------
# Kernel: streaming fused projection + online segment softmax + scatter-add.
# ---------------------------------------------------------------------------
def _stream_kernel(x_ref, batch_ref, wcat_ref, bcat_ref,   # inputs
                   g_ref, acc_ref, segmax_ref,              # outputs (acc/segmax resident)
                   *, s_pad, gate_col):
    t = pl.program_id(0)

    @pl.when(t == 0)
    def _init():
        acc_ref[...] = jnp.zeros(acc_ref.shape, jnp.float32)
        segmax_ref[...] = jnp.full(segmax_ref.shape, -1e30, jnp.float32)

    # One MXU pass: columns [0:Fo]=nn(x), [ones_col]=1.0, [gate_col]=gate_nn(x).
    hg = jnp.dot(x_ref[...], wcat_ref[...],
                 preferred_element_type=jnp.float32) + bcat_ref[...]   # [Nt, fcat] f32

    # Lane-dense gate logits: transpose only the 128-block containing gate_col.
    gb, gs = gate_col // 128, gate_col % 128
    g_row = jnp.transpose(hg[:, gb * 128:(gb + 1) * 128])[gs:gs + 1, :]   # [1, Nt]

    # Segment membership: segments on sublanes, nodes on lanes.
    batch_row = batch_ref[0]                                              # [1, Nt] int32
    nt = batch_row.shape[-1]
    seg_ids = jax.lax.broadcasted_iota(jnp.int32, (s_pad, nt), 0)
    member = seg_ids == batch_row                                         # [S_pad, Nt]
    m = member.astype(jnp.float32)

    neg = jnp.float32(-1e30)
    tile_max = jnp.max(jnp.where(member, g_row, neg), axis=1, keepdims=True)  # [S_pad,1]
    old_max = segmax_ref[...]
    new_max = jnp.maximum(old_max, tile_max)
    corr = jnp.exp(old_max - new_max)                                     # [S_pad, 1]

    # Per-node max gathered through the one-hot membership.
    node_max = jnp.sum(m * new_max, axis=0, keepdims=True)                # [1, Nt]
    p = m * jnp.exp(g_row - node_max)                                     # [S_pad, Nt]

    segmax_ref[...] = new_max
    # Scatter-add (and, via the ones column, the per-segment sum) as one f32 MXU
    # contraction into the resident output accumulator.
    acc_ref[...] = acc_ref[...] * corr + jnp.dot(
        p, hg, preferred_element_type=jnp.float32)

    # Lane-dense gate-logit slab (finalized in plain JAX in the wrapper).
    g_ref[0] = g_row


# ---------------------------------------------------------------------------
# Wrapper
# ---------------------------------------------------------------------------
def global_attention(x, batch, wg, bg, w, b, num_graphs, *,
                     node_tile=512, compute_dtype=jnp.float32):
    """x: [N, F], batch: [N] int segment ids (< num_graphs).
    wg/bg: gate_nn Linear(F,1) params; w/b: nn Linear(F,Fo) params.
    Returns (out [num_graphs, Fo], gate [N, 1])."""
    N, F = x.shape
    Fo = w.shape[-1]
    S = int(num_graphs)

    f_pad = _round_up(F, 128)
    s_pad = _round_up(max(S, 1), 8)
    # Fused weight columns: [0:Fo]=W, [Fo]=ones column, [Fo+1]=gate column.
    ones_col = Fo
    gate_col = Fo + 1
    fcat = _round_up(Fo + 2, 128)

    mxu_dtype = jnp.bfloat16 if compute_dtype == jnp.bfloat16 else jnp.float32
    x_bytes = 2 if mxu_dtype == jnp.bfloat16 else 4

    # Generation-aware VMEM sizing (v7x: 64 MiB/TC; v5e/v6e: 128 MiB).
    try:
        vmem_cap = int(getattr(pltpu.get_tpu_info(), "vmem_capacity_bytes",
                               64 * 1024 * 1024))
    except Exception:  # pragma: no cover - off-TPU fallback
        vmem_cap = 64 * 1024 * 1024

    def _vmem_need(nt):
        return (2 * nt * f_pad * x_bytes            # x double-buffer
                + 2 * nt * 4                        # batch ids
                + 2 * f_pad * fcat * x_bytes        # fused weights
                + 2 * fcat * 4                      # fused bias
                + 2 * nt * 4                        # gate-logit out block
                + 2 * s_pad * fcat * 4              # resident accumulator
                + 2 * s_pad * 4)                    # resident segment max

    while node_tile > 128 and _vmem_need(node_tile) > (vmem_cap * 6) // 10:
        node_tile //= 2
    vmem_limit = int(min((vmem_cap * 3) // 4,
                         max(2 * _vmem_need(node_tile), 32 * 1024 * 1024)))

    n_pad = _round_up(max(N, 1), node_tile)
    num_tiles = n_pad // node_tile

    # x: pass straight through when already aligned; otherwise pad once.
    # (bf16 compute: x is stored in HBM as bf16 -> half the bytes, no in-kernel cast.)
    needs_pad = (N != n_pad) or (F != f_pad)
    if needs_pad:
        x_in = jnp.zeros((n_pad, f_pad), mxu_dtype).at[:N, :F].set(
            x.astype(mxu_dtype))
    elif x.dtype != mxu_dtype:
        x_in = x.astype(mxu_dtype)
    else:
        x_in = x

    # Padded nodes get an out-of-range segment id -> they never contribute.
    batch_p = jnp.full((n_pad,), s_pad, jnp.int32).at[:N].set(batch.astype(jnp.int32))
    batch_rows = batch_p.reshape(num_tiles, 1, node_tile)

    w_cat = jnp.zeros((f_pad, fcat), jnp.float32)
    w_cat = w_cat.at[:F, :Fo].set(w.astype(jnp.float32))
    w_cat = w_cat.at[:F, gate_col].set(wg.reshape(F).astype(jnp.float32))
    w_cat = w_cat.astype(mxu_dtype)
    b_cat = jnp.zeros((1, fcat), jnp.float32)
    b_cat = b_cat.at[0, :Fo].set(b.reshape(Fo).astype(jnp.float32))
    b_cat = b_cat.at[0, ones_col].set(1.0)
    b_cat = b_cat.at[0, gate_col].set(jnp.asarray(bg, jnp.float32).reshape(()))

    cost = pl.CostEstimate(
        flops=int(2 * n_pad * f_pad * fcat + 2 * s_pad * n_pad * fcat),
        transcendentals=int(n_pad + 2 * s_pad * num_tiles),
        bytes_accessed=int(n_pad * f_pad * x_bytes + n_pad * 4
                           + f_pad * fcat * x_bytes + fcat * 4
                           + n_pad * 4 + s_pad * fcat * 4 + s_pad * 4),
    )

    kernel = functools.partial(_stream_kernel, s_pad=s_pad, gate_col=gate_col)
    g_slabs, acc_raw, segmax_raw = pl.pallas_call(
        kernel,
        out_shape=(
            jax.ShapeDtypeStruct((num_tiles, 1, node_tile), jnp.float32),  # gate logits
            jax.ShapeDtypeStruct((s_pad, fcat), jnp.float32),              # raw accumulator
            jax.ShapeDtypeStruct((s_pad, 1), jnp.float32),                 # seg max
        ),
        grid=(num_tiles,),
        in_specs=[
            pl.BlockSpec((node_tile, f_pad), lambda t: (t, 0)),
            pl.BlockSpec((1, 1, node_tile), lambda t: (t, 0, 0)),
            pl.BlockSpec((f_pad, fcat), lambda t: (0, 0)),
            pl.BlockSpec((1, fcat), lambda t: (0, 0)),
        ],
        out_specs=(
            pl.BlockSpec((1, 1, node_tile), lambda t: (t, 0, 0)),
            pl.BlockSpec((s_pad, fcat), lambda t: (0, 0)),   # resident accumulator
            pl.BlockSpec((s_pad, 1), lambda t: (0, 0)),      # resident running max
        ),
        compiler_params=pltpu.CompilerParams(
            dimension_semantics=("arbitrary",),
            vmem_limit_bytes=vmem_limit),
        cost_estimate=cost,
    )(x_in, batch_rows, w_cat, b_cat)

    # Plain-JAX finalize (two gathers + elementwise math; no second kernel launch).
    seg_sum = acc_raw[:S, ones_col]                     # exact per-segment sums
    seg_max = segmax_raw[:S, 0]
    out = acc_raw[:S, :Fo] / (seg_sum[:, None] + 1e-16)
    g = g_slabs.reshape(n_pad)[:N]
    gate = jnp.exp(g - seg_max[batch]) / (seg_sum[batch] + 1e-16)
    return out.astype(x.dtype), gate[:, None].astype(x.dtype)


# ---------------------------------------------------------------------------
# Plain-JAX reference
# ---------------------------------------------------------------------------
def _reference(x, batch, wg, bg, w, b, num_graphs):
    g = x @ wg + bg                                  # [N, 1]
    h = x @ w + b                                    # [N, Fo]
    seg_max = jax.ops.segment_max(g[:, 0], batch, num_segments=num_graphs)
    e = jnp.exp(g[:, 0] - seg_max[batch])
    seg_sum = jax.ops.segment_sum(e, batch, num_segments=num_graphs)
    gate = (e / (seg_sum[batch] + 1e-16))[:, None]
    out = jax.ops.segment_sum(gate * h, batch, num_segments=num_graphs)
    return out, gate


if __name__ == "__main__":
    N, F, Fo, S = 384, 128, 128, 5    # 384 nodes, 128 feats in/out, 5 graphs

    key = jax.random.PRNGKey(0)
    kx, kwg, kbg, kw, kb = jax.random.split(key, 5)

    x = jax.random.normal(kx, (N, F), dtype=jnp.float32)
    batch = jnp.clip(jnp.arange(N, dtype=jnp.int32) * S // N, 0, S - 1)  # sorted ids

    wg = jax.random.normal(kwg, (F, 1), dtype=jnp.float32) * 0.1
    bg = jax.random.normal(kbg, (1, 1), dtype=jnp.float32) * 0.1
    w = jax.random.normal(kw, (F, Fo), dtype=jnp.float32) * 0.1
    b = jax.random.normal(kb, (1, Fo), dtype=jnp.float32) * 0.1

    ref_out, ref_gate = _reference(x, batch, wg, bg, w, b, S)

    # Default (large) node tile, f32 MXU operands: tight check.
    out, gate = global_attention(x, batch, wg, bg, w, b, S,
                                 compute_dtype=jnp.float32)
    jax.block_until_ready((out, gate))
    assert np.allclose(np.asarray(out), np.asarray(ref_out), atol=3e-5, rtol=3e-5)
    assert np.allclose(np.asarray(gate), np.asarray(ref_gate), atol=3e-5, rtol=3e-5)

    # Small tile -> multi-tile grid exercising the online (flash-style) accumulation
    # and the no-copy x pass-through path (N % 128 == 0, F % 128 == 0).
    out_mt, gate_mt = global_attention(x, batch, wg, bg, w, b, S,
                                       node_tile=128, compute_dtype=jnp.float32)
    jax.block_until_ready((out_mt, gate_mt))
    assert np.allclose(np.asarray(out_mt), np.asarray(ref_out), atol=3e-5, rtol=3e-5)
    assert np.allclose(np.asarray(gate_mt), np.asarray(ref_gate), atol=3e-5, rtol=3e-5)

    # bf16 MXU operands (v6e/v7x fast path, bf16 x/W in HBM): loose check.
    out_bf, gate_bf = global_attention(x, batch, wg, bg, w, b, S,
                                       compute_dtype=jnp.bfloat16)
    jax.block_until_ready((out_bf, gate_bf))
    assert np.allclose(np.asarray(out_bf), np.asarray(ref_out), atol=5e-2, rtol=5e-2)
    assert np.allclose(np.asarray(gate_bf), np.asarray(ref_gate), atol=5e-2, rtol=5e-2)

    print("KERNEL_OK")
</pallas_src>

<mosaic_0001>
module attributes {stable_mosaic.version = 11 : i64} {
  func.func @_stream_kernel(%arg0: i32, %arg1: memref<512x128xf32, #tpu.memory_space<vmem>>, %arg2: memref<1x1x512xi32, #tpu.memory_space<vmem>>, %arg3: memref<128x256xf32, #tpu.memory_space<vmem>>, %arg4: memref<1x256xf32, #tpu.memory_space<vmem>>, %arg5: memref<1x1x512xf32, #tpu.memory_space<vmem>>, %arg6: memref<8x256xf32, #tpu.memory_space<vmem>>, %arg7: memref<8x1xf32, #tpu.memory_space<vmem>>) attributes {dimension_semantics = [#tpu.dimension_semantics<arbitrary>], iteration_bounds = array<i64: 1>, scalar_prefetch = 0 : i64, scratch_operands = 0 : i64, tpu.core_type = #tpu.core_type<tc>, window_params = [{transform_indices = @transform_0, window_bounds = array<i64: 512, 128>}, {transform_indices = @transform_1, window_bounds = array<i64: 1, 1, 512>}, {pipeline_mode = #tpu.pipeline_mode<synchronous>, transform_indices = @transform_2, window_bounds = array<i64: 128, 256>}, {pipeline_mode = #tpu.pipeline_mode<synchronous>, transform_indices = @transform_3, window_bounds = array<i64: 1, 256>}, {transform_indices = @transform_4, window_bounds = array<i64: 1, 1, 512>}, {pipeline_mode = #tpu.pipeline_mode<synchronous>, transform_indices = @transform_5, window_bounds = array<i64: 8, 256>}, {pipeline_mode = #tpu.pipeline_mode<synchronous>, transform_indices = @transform_6, window_bounds = array<i64: 8, 1>}]} {
    %c0_i32 = arith.constant 0 : i32
    %0 = arith.cmpi eq, %arg0, %c0_i32 : i32
    %1 = arith.extui %0 : i1 to i32
    %c0_i32_0 = arith.constant 0 : i32
    %2 = arith.cmpi ne, %1, %c0_i32_0 : i32
    scf.if %2 {
      %cst_24 = arith.constant 0.000000e+00 : f32
      %47 = vector.broadcast %cst_24 : f32 to vector<8x256xf32>
      %c0_25 = arith.constant 0 : index
      %c0_26 = arith.constant 0 : index
      %48 = vector.load %arg6[%c0_25, %c0_26] : memref<8x256xf32, #tpu.memory_space<vmem>>, vector<8x256xf32>
      tpu.vector_store %arg6[%c0_25, %c0_26], %47 {strides = array<i32>} : memref<8x256xf32, #tpu.memory_space<vmem>>, vector<8x256xf32>,
      %cst_27 = arith.constant -1.000000e+30 : f32
      %49 = vector.broadcast %cst_27 : f32 to vector<8x1xf32>
      %c0_28 = arith.constant 0 : index
      %c0_29 = arith.constant 0 : index
      %50 = vector.load %arg7[%c0_28, %c0_29] : memref<8x1xf32, #tpu.memory_space<vmem>>, vector<8x1xf32>
      tpu.vector_store %arg7[%c0_28, %c0_29], %49 {strides = array<i32>} : memref<8x1xf32, #tpu.memory_space<vmem>>, vector<8x1xf32>,
    } else {
    }
    %c0 = arith.constant 0 : index
    %c0_1 = arith.constant 0 : index
    %3 = vector.load %arg1[%c0, %c0_1] : memref<512x128xf32, #tpu.memory_space<vmem>>, vector<512x128xf32>
    %c0_2 = arith.constant 0 : index
    %c0_3 = arith.constant 0 : index
    %4 = vector.load %arg3[%c0_2, %c0_3] : memref<128x256xf32, #tpu.memory_space<vmem>>, vector<128x256xf32>
    %cst = arith.constant dense<0.000000e+00> : vector<512x256xf32>
    %5 = tpu.matmul %3, %4, %cst {dimension_numbers = #tpu.dot_dimension_numbers<[1], [0], [0], [1], [0, 0, 1, 1], [], []>} : vector<512x128xf32>, vector<128x256xf32>, vector<512x256xf32> -> vector<512x256xf32>
    %c0_4 = arith.constant 0 : index
    %c0_5 = arith.constant 0 : index
    %6 = vector.load %arg4[%c0_4, %c0_5] : memref<1x256xf32, #tpu.memory_space<vmem>>, vector<1x256xf32>
    %7 = vector.broadcast %6 : vector<1x256xf32> to vector<512x256xf32>
    %8 = arith.addf %5, %7 : vector<512x256xf32>
    %9 = vector.extract_strided_slice %8 {offsets = [0, 128], sizes = [512, 128], strides = [1, 1]} : vector<512x256xf32> to vector<512x128xf32>
    %10 = tpu.transpose %9, [1, 0] : vector<512x128xf32> -> vector<128x512xf32>
    %11 = vector.extract_strided_slice %10 {offsets = [1, 0], sizes = [1, 512], strides = [1, 1]} : vector<128x512xf32> to vector<1x512xf32>
    %c0_6 = arith.constant 0 : index
    %c0_7 = arith.constant 0 : index
    %c0_8 = arith.constant 0 : index
    %12 = vector.load %arg2[%c0_6, %c0_7, %c0_8] : memref<1x1x512xi32, #tpu.memory_space<vmem>>, vector<1x1x512xi32>
    %13 = vector.shape_cast %12 : vector<1x1x512xi32> to vector<1x512xi32>
    %14 = tpu.iota {dimensions = array<i32: 0>} : vector<8x512xi32>
    %15 = vector.broadcast %13 : vector<1x512xi32> to vector<8x512xi32>
    %16 = arith.cmpi eq, %14, %15 : vector<8x512xi32>
    %17 = arith.extui %16 : vector<8x512xi1> to vector<8x512xi32>
    %18 = arith.sitofp %17 : vector<8x512xi32> to vector<8x512xf32>
    %cst_9 = arith.constant -1.000000e+30 : f32
    %19 = vector.shape_cast %11 : vector<1x512xf32> to vector<1x512xf32>
    %20 = vector.broadcast %19 : vector<1x512xf32> to vector<8x512xf32>
    %21 = vector.broadcast %cst_9 : f32 to vector<8x512xf32>
    %22 = arith.select %16, %20, %21 : vector<8x512xi1>, vector<8x512xf32>
    %cst_10 = arith.constant dense<0xFF800000> : vector<8xf32>
    %23 = vector.multi_reduction <maximumf>, %22, %cst_10 [1] : vector<8x512xf32> to vector<8xf32>
    %24 = vector.shape_cast %23 : vector<8xf32> to vector<8x1xf32>
    %c0_11 = arith.constant 0 : index
    %c0_12 = arith.constant 0 : index
    %25 = vector.load %arg7[%c0_11, %c0_12] : memref<8x1xf32, #tpu.memory_space<vmem>>, vector<8x1xf32>
    %26 = arith.maximumf %25, %24 : vector<8x1xf32>
    %27 = arith.subf %25, %26 : vector<8x1xf32>
    %28 = math.exp %27 : vector<8x1xf32>
    %29 = vector.broadcast %26 : vector<8x1xf32> to vector<8x512xf32>
    %30 = arith.mulf %18, %29 : vector<8x512xf32>
    %cst_13 = arith.constant dense<0.000000e+00> : vector<512xf32>
    %31 = vector.multi_reduction <add>, %30, %cst_13 [0] : vector<8x512xf32> to vector<512xf32>
    %32 = vector.shape_cast %31 : vector<512xf32> to vector<1x512xf32>
    %33 = arith.subf %11, %32 : vector<1x512xf32>
    %34 = math.exp %33 : vector<1x512xf32>
    %35 = vector.broadcast %34 : vector<1x512xf32> to vector<8x512xf32>
    %36 = arith.mulf %18, %35 : vector<8x512xf32>
    %c0_14 = arith.constant 0 : index
    %c0_15 = arith.constant 0 : index
    %37 = vector.load %arg7[%c0_14, %c0_15] : memref<8x1xf32, #tpu.memory_space<vmem>>, vector<8x1xf32>
    tpu.vector_store %arg7[%c0_14, %c0_15], %26 {strides = array<i32>} : memref<8x1xf32, #tpu.memory_space<vmem>>, vector<8x1xf32>,
    %c0_16 = arith.constant 0 : index
    %c0_17 = arith.constant 0 : index
    %38 = vector.load %arg6[%c0_16, %c0_17] : memref<8x256xf32, #tpu.memory_space<vmem>>, vector<8x256xf32>
    %39 = vector.broadcast %28 : vector<8x1xf32> to vector<8x256xf32>
    %40 = arith.mulf %38, %39 : vector<8x256xf32>
    %cst_18 = arith.constant dense<0.000000e+00> : vector<8x256xf32>
    %41 = tpu.matmul %36, %8, %cst_18 {dimension_numbers = #tpu.dot_dimension_numbers<[1], [0], [0], [1], [0, 0, 1, 1], [], []>} : vector<8x512xf32>, vector<512x256xf32>, vector<8x256xf32> -> vector<8x256xf32>
    %42 = arith.addf %40, %41 : vector<8x256xf32>
    %c0_19 = arith.constant 0 : index
    %c0_20 = arith.constant 0 : index
    %43 = vector.load %arg6[%c0_19, %c0_20] : memref<8x256xf32, #tpu.memory_space<vmem>>, vector<8x256xf32>
    tpu.vector_store %arg6[%c0_19, %c0_20], %42 {strides = array<i32>} : memref<8x256xf32, #tpu.memory_space<vmem>>, vector<8x256xf32>,
    %c0_21 = arith.constant 0 : index
    %c0_22 = arith.constant 0 : index
    %c0_23 = arith.constant 0 : index
    %44 = vector.load %arg5[%c0_21, %c0_22, %c0_23] : memref<1x1x512xf32, #tpu.memory_space<vmem>>, vector<1x1x512xf32>
    %45 = vector.shape_cast %44 : vector<1x1x512xf32> to vector<1x512xf32>
    %46 = vector.shape_cast %11 : vector<1x512xf32> to vector<1x1x512xf32>
    tpu.vector_store %arg5[%c0_21, %c0_22, %c0_23], %46 {strides = array<i32>} : memref<1x1x512xf32, #tpu.memory_space<vmem>>, vector<1x1x512xf32>,
    return
  }
  func.func @transform_0(%arg0: i32) -> (i32, i32) {
    %c0_i32 = arith.constant 0 : i32
    %c0_i32_0 = arith.constant 0 : i32
    return %arg0, %c0_i32 : i32, i32
  }
  func.func @transform_1(%arg0: i32) -> (i32, i32, i32) {
    %c0_i32 = arith.constant 0 : i32
    %c0_i32_0 = arith.constant 0 : i32
    %c0_i32_1 = arith.constant 0 : i32
    return %arg0, %c0_i32, %c0_i32_0 : i32, i32, i32
  }
  func.func @transform_2(%arg0: i32) -> (i32, i32) {
    %c0_i32 = arith.constant 0 : i32
    %c0_i32_0 = arith.constant 0 : i32
    %c0_i32_1 = arith.constant 0 : i32
    return %c0_i32, %c0_i32_0 : i32, i32
  }
  func.func @transform_3(%arg0: i32) -> (i32, i32) {
    %c0_i32 = arith.constant 0 : i32
    %c0_i32_0 = arith.constant 0 : i32
    %c0_i32_1 = arith.constant 0 : i32
    return %c0_i32, %c0_i32_0 : i32, i32
  }
  func.func @transform_4(%arg0: i32) -> (i32, i32, i32) {
    %c0_i32 = arith.constant 0 : i32
    %c0_i32_0 = arith.constant 0 : i32
    %c0_i32_1 = arith.constant 0 : i32
    return %arg0, %c0_i32, %c0_i32_0 : i32, i32, i32
  }
  func.func @transform_5(%arg0: i32) -> (i32, i32) {
    %c0_i32 = arith.constant 0 : i32
    %c0_i32_0 = arith.constant 0 : i32
    %c0_i32_1 = arith.constant 0 : i32
    return %c0_i32, %c0_i32_0 : i32, i32
  }
  func.func @transform_6(%arg0: i32) -> (i32, i32) {
    %c0_i32 = arith.constant 0 : i32
    %c0_i32_0 = arith.constant 0 : i32
    %c0_i32_1 = arith.constant 0 : i32
    return %c0_i32, %c0_i32_0 : i32, i32
  }
}

</mosaic_0001>

<bundles_post_ra>
// kernel: tpu_custom_call.1
= control target key start
LH: loop header
LB: loop body
LE: loop exit
PB: predicated region body
PF: predicated region fallthrough
CT: control target
= control target key end

     0   :  { %12 = vsyncpa [#allocation3], 0  ;;  %s2051_s0 = inlined_call_operand.hbm [shape: f32[512,128], index: 0, kind: input, shape index: {}]   ;;  %s2052_s1 = inlined_call_operand.hbm [shape: s32[1,1,512], index: 1, kind: input, shape index: {}]   ;;  %s2053_s2 = inlined_call_operand.hbm [shape: f32[128,256], index: 2, kind: input, shape index: {}]   ;;  %s2054_s3 = inlined_call_operand.vmem [shape: f32[1,256], index: 3, kind: input, shape index: {}]   ;;  %s2055_s4 = inlined_call_operand.hbm [shape: f32[1,1,512], index: 4, kind: output, shape index: {0}]   ;;  %s2056_s5 = inlined_call_operand.hbm [shape: f32[8,256], index: 5, kind: output, shape index: {1}]   ;;  %s2057_s6 = inlined_call_operand.vmem [shape: f32[8,1], index: 6, kind: output, shape index: {2}]  }
   0x1   :  { %13 = vsyncpa [#allocation6], 0 }
   0x2   :  { %14 = vsyncpa [#allocation4], 0 }
   0x3   :  { %15 = vsyncpa [#allocation10], 0  ;;  %s1274_s21 = smov [#allocation5]   ;;  %s1275_s23 = smov [#allocation2]  }
   0x4   :  { %s34_s22 = sshll.u32 %s1274_s21, 4  ;;  %s21_s24 = sshll.u32 %s1275_s23, 4  ;;  %s35_s22 = int_to_ptr.vmem [resolvable:$true] %s34_s22  ;;  %s22_s24 = int_to_ptr.vmem [resolvable:$true] %s21_s24 }
   0x5   :  { %s1174_s25 = scalar_lea.vmem %s35_s22, 64  ;;  %p1179_p1 = scmp.lt.s32.totalorder %s35_s22, %s35_s22 }
   0x6   :  { %p1175_p0 = scmp.ne.s32.totalorder %s35_s22, %s1174_s25  ;;  %p1180_p2 = scmp.lt.s32.totalorder %s1174_s25, %s1174_s25 }
   0x8   :  { %p1181_p3 = por %p1180_p2, %p1179_p1 }
   0xa   :  { %p1182_p4 = pnand %p1181_p3, %p1175_p0 }
   0xc   :  { %1185 = shalt.err (!%p1182_p4)
}
   0xd   :  { %37 = dma.hbm_to_vmem [thread:$0]  %s2052_s1, 64, %s35_s22, [#allocation6]  }
   0xe   :  { %s1194_s28 = scalar_lea.vmem %s22_s24, 8192  ;;  %p1199_p6 = scmp.lt.s32.totalorder %s22_s24, %s22_s24 }
   0xf   :  { %p1195_p5 = scmp.ne.s32.totalorder %s22_s24, %s1194_s28  ;;  %p1200_p7 = scmp.lt.s32.totalorder %s1194_s28, %s1194_s28 }
  0x11   :  { %p1201_p8 = por %p1200_p7, %p1199_p6 }
  0x13   :  { %p1202_p9 = pnand %p1201_p8, %p1195_p5 }
  0x15   :  { %1205 = shalt.err (!%p1202_p9)
}
  0x16   :  { %s1276_s29 = smov 128   ;;  %s1277_s30 = smov 8  }
  0x17   :  { %27 = dma.hbm_to_vmem [thread:$0]  %s2051_s0, 8192, %s22_s24, [#allocation3], %s1276_s29, %s1276_s29, %s1277_s30  }
  0x18   :  { %s1278_s9 = smov [#allocation7]  }
  0x19   :  { %s43_s10 = sshll.u32 %s1278_s9, 4  ;;  %s44_s10 = int_to_ptr.vmem [resolvable:$true] %s43_s10 }
  0x1a   :  { %s1214_s11 = scalar_lea.vmem %s44_s10, 4096  ;;  %p1219_p11 = scmp.lt.s32.totalorder %s44_s10, %s44_s10 }
  0x1b   :  { %p1215_p10 = scmp.ne.s32.totalorder %s44_s10, %s1214_s11  ;;  %p1220_p12 = scmp.lt.s32.totalorder %s1214_s11, %s1214_s11 }
  0x1d   :  { %p1221_p13 = por %p1220_p12, %p1219_p11 }
  0x1f   :  { %p1222_p0 = pnand %p1221_p13, %p1215_p10 }
  0x21   :  { %1225 = shalt.err (!%p1222_p0)
}
  0x22   :  { %s1279_s1 = smov 256   ;;  %s1280_s12 = smov 16  }
  0x23   :  { %49 = dma.hbm_to_vmem [thread:$0]  %s2053_s2, 4096, %s44_s10, [#allocation6], %s1279_s1, %s1279_s1, %s1280_s12  }
  0x24   :  { %1266 = dma.done.wait [#allocation3], 8192  }
  0x25   :  { %1267 = vsyncadd [#allocation3], 4294959104 }
  0x26   :  { %1268 = dma.done.wait [#allocation6], 4160  }
  0x27   :  { %1269 = vsyncadd [#allocation6], 4294963136  ;;  %v2058_v0 = vmov 0.0   ;;  %v164_v1 = vld [vmem:[#allocation7 + $0xf8] sm:$0xff]  ;;  %v163_v2 = vld [vmem:[#allocation7 + $0xf0] sm:$0xff]  ;;  %vm67_vm0 = vcmask 7168  }
  0x28   :  { %241 = vmatprep.mubr.f32.mxu0 %v2058_v0  ;;  %487 = vmatprep.mubr.f32.mxu1 %v2058_v0  ;;  %v162_v3 = vld [vmem:[#allocation7 + $0xe8] sm:$0xff]  ;;  %v161_v4 = vld [vmem:[#allocation7 + $0xe0] sm:$0xff]  ;;  %v160_v5 = vld [vmem:[#allocation7 + $0xd8] sm:$0xff] }
  0x29   :  { %177 = vmatprep.subr.mxu0 %v164_v1  ;;  %1109 = vmatprep.subr.mxu1 %v164_v1  ;;  %v159_v6 = vld [vmem:[#allocation7 + $0xd0] sm:$0xff]  ;;  %v158_v7 = vld [vmem:[#allocation7 + $0xc8] sm:$0xff]  ;;  %v157_v8 = vld [vmem:[#allocation7 + $0xc0] sm:$0xff] }
  0x2a   :  { %178 = vmatpush1.msra.mxu0 %v163_v2  ;;  %1125 = vmatpush1.msra.mxu1 %v163_v2  ;;  %v156_v9 = vld [vmem:[#allocation7 + $0xb8] sm:$0xff]  ;;  %v155_v10 = vld [vmem:[#allocation7 + $0xb0] sm:$0xff]  ;;  %v154_v11 = vld [vmem:[#allocation7 + $0xa8] sm:$0xff] }
  0x2b   :  { %179 = vmatprep.subr.mxu0 %v162_v3  ;;  %1110 = vmatprep.subr.mxu1 %v162_v3  ;;  %v153_v12 = vld [vmem:[#allocation7 + $0xa0] sm:$0xff]  ;;  %v152_v13 = vld [vmem:[#allocation7 + $0x98] sm:$0xff]  ;;  %v151_v14 = vld [vmem:[#allocation7 + $0x90] sm:$0xff] }
  0x2c   :  { %180 = vmatpush1.msra.mxu0 %v161_v4  ;;  %1126 = vmatpush1.msra.mxu1 %v161_v4  ;;  %v150_v15 = vld [vmem:[#allocation7 + $0x88] sm:$0xff]  ;;  %v149_v16 = vld [vmem:[#allocation7 + $0x80] sm:$0xff]  ;;  %v148_v17 = vld [vmem:[#allocation7 + $0x78] sm:$0xff] }
  0x2d   :  { %181 = vmatprep.subr.mxu0 %v160_v5  ;;  %1111 = vmatprep.subr.mxu1 %v160_v5  ;;  %v147_v18 = vld [vmem:[#allocation7 + $0x70] sm:$0xff]  ;;  %v146_v19 = vld [vmem:[#allocation7 + $0x68] sm:$0xff]  ;;  %v145_v20 = vld [vmem:[#allocation7 + $0x60] sm:$0xff] }
  0x2e   :  { %182 = vmatpush1.msra.mxu0 %v159_v6  ;;  %1127 = vmatpush1.msra.mxu1 %v159_v6  ;;  %v144_v21 = vld [vmem:[#allocation7 + $0x58] sm:$0xff]  ;;  %v143_v22 = vld [vmem:[#allocation7 + $0x50] sm:$0xff]  ;;  %v142_v23 = vld [vmem:[#allocation7 + $0x48] sm:$0xff] }
  0x2f   :  { %183 = vmatprep.subr.mxu0 %v158_v7  ;;  %1112 = vmatprep.subr.mxu1 %v158_v7  ;;  %v141_v24 = vld [vmem:[#allocation7 + $0x40] sm:$0xff]  ;;  %v140_v25 = vld [vmem:[#allocation7 + $0x38] sm:$0xff]  ;;  %v139_v26 = vld [vmem:[#allocation7 + $0x30] sm:$0xff] }
  0x30   :  { %184 = vmatpush1.msra.mxu0 %v157_v8  ;;  %1128 = vmatpush1.msra.mxu1 %v157_v8  ;;  %v138_v27 = vld [vmem:[#allocation7 + $0x28] sm:$0xff]  ;;  %v137_v28 = vld [vmem:[#allocation7 + $0x20] sm:$0xff]  ;;  %v136_v29 = vld [vmem:[#allocation7 + $0x18] sm:$0xff] }
  0x31   :  { %185 = vmatprep.subr.mxu0 %v156_v9  ;;  %1113 = vmatprep.subr.mxu1 %v156_v9  ;;  %v135_v30 = vld [vmem:[#allocation7 + $0x10] sm:$0xff]  ;;  %v134_v31 = vld [vmem:[#allocation7 + $0x8] sm:$0xff]  ;;  %v133_v32 = vld [vmem:[#allocation7] sm:$0xff] }
  0x32   :  { %186 = vmatpush1.msra.mxu0 %v155_v10  ;;  %1129 = vmatpush1.msra.mxu1 %v155_v10  ;;  %v69_v33 = vld [vmem:[#allocation2] sm:$0xff]  ;;  %v110_v34 = vld [vmem:[#allocation2 + $0x148] sm:$0xff]  ;;  %v111_v36 = vld [vmem:[#allocation2 + $0x150] sm:$0xff] }
  0x33   :  { %187 = vmatprep.subr.mxu0 %v154_v11  ;;  %1114 = vmatprep.subr.mxu1 %v154_v11  ;;  %v70_v35 = vld [vmem:[#allocation2 + $0x8] sm:$0xff]  ;;  %v71_v37 = vld [vmem:[#allocation2 + $0x10] sm:$0xff]  ;;  %v112_v38 = vld [vmem:[#allocation2 + $0x158] sm:$0xff] }
  0x34   :  { %188 = vmatpush1.msra.mxu0 %v153_v12  ;;  %1130 = vmatpush1.msra.mxu1 %v153_v12  ;;  %v72_v39 = vld [vmem:[#allocation2 + $0x18] sm:$0xff]  ;;  %v113_v40 = vld [vmem:[#allocation2 + $0x160] sm:$0xff]  ;;  %v114_v42 = vld [vmem:[#allocation2 + $0x168] sm:$0xff] }
  0x35   :  { %189 = vmatprep.subr.mxu0 %v152_v13  ;;  %1115 = vmatprep.subr.mxu1 %v152_v13  ;;  %v73_v41 = vld [vmem:[#allocation2 + $0x20] sm:$0xff]  ;;  %v74_v43 = vld [vmem:[#allocation2 + $0x28] sm:$0xff]  ;;  %v115_v44 = vld [vmem:[#allocation2 + $0x170] sm:$0xff] }
  0x36   :  { %190 = vmatpush1.msra.mxu0 %v151_v14  ;;  %1131 = vmatpush1.msra.mxu1 %v151_v14  ;;  %v75_v45 = vld [vmem:[#allocation2 + $0x30] sm:$0xff]  ;;  %v116_v46 = vld [vmem:[#allocation2 + $0x178] sm:$0xff]  ;;  %v117_v48 = vld [vmem:[#allocation2 + $0x180] sm:$0xff] }
  0x37   :  { %191 = vmatprep.subr.mxu0 %v150_v15  ;;  %1116 = vmatprep.subr.mxu1 %v150_v15  ;;  %v76_v47 = vld [vmem:[#allocation2 + $0x38] sm:$0xff]  ;;  %v77_v49 = vld [vmem:[#allocation2 + $0x40] sm:$0xff]  ;;  %v118_v50 = vld [vmem:[#allocation2 + $0x188] sm:$0xff] }
  0x38   :  { %192 = vmatpush1.msra.mxu0 %v149_v16  ;;  %1132 = vmatpush1.msra.mxu1 %v149_v16  ;;  %v78_v51 = vld [vmem:[#allocation2 + $0x48] sm:$0xff]  ;;  %v119_v52 = vld [vmem:[#allocation2 + $0x190] sm:$0xff]  ;;  %v120_v54 = vld [vmem:[#allocation2 + $0x198] sm:$0xff] }
  0x39   :  { %193 = vmatprep.subr.mxu0 %v148_v17  ;;  %1117 = vmatprep.subr.mxu1 %v148_v17  ;;  %v79_v53 = vld [vmem:[#allocation2 + $0x50] sm:$0xff]  ;;  %v80_v55 = vld [vmem:[#allocation2 + $0x58] sm:$0xff]  ;;  %v121_v56 = vld [vmem:[#allocation2 + $0x1a0] sm:$0xff] }
  0x3a   :  { %194 = vmatpush1.msra.mxu0 %v147_v18  ;;  %1133 = vmatpush1.msra.mxu1 %v147_v18  ;;  %v81_v57 = vld [vmem:[#allocation2 + $0x60] sm:$0xff]  ;;  %v122_v58 = vld [vmem:[#allocation2 + $0x1a8] sm:$0xff]  ;;  %v123_v60 = vld [vmem:[#allocation2 + $0x1b0] sm:$0xff] }
  0x3b   :  { %195 = vmatprep.subr.mxu0 %v146_v19  ;;  %1118 = vmatprep.subr.mxu1 %v146_v19  ;;  %v82_v59 = vld [vmem:[#allocation2 + $0x68] sm:$0xff]  ;;  %v83_v61 = vld [vmem:[#allocation2 + $0x70] sm:$0xff]  ;;  %v124_v62 = vld [vmem:[#allocation2 + $0x1b8] sm:$0xff] }
  0x3c   :  { %196 = vmatpush1.msra.mxu0 %v145_v20  ;;  %1134 = vmatpush1.msra.mxu1 %v145_v20  ;;  %v84_v63 = vld [vmem:[#allocation2 + $0x78] sm:$0xff]  ;;  %v125_v1 = vld [vmem:[#allocation2 + $0x1c0] sm:$0xff]  ;;  %v126_v3 = vld [vmem:[#allocation2 + $0x1c8] sm:$0xff] }
  0x3d   :  { %197 = vmatprep.subr.mxu0 %v144_v21  ;;  %1119 = vmatprep.subr.mxu1 %v144_v21  ;;  %v85_v2 = vld [vmem:[#allocation2 + $0x80] sm:$0xff]  ;;  %v86_v4 = vld [vmem:[#allocation2 + $0x88] sm:$0xff]  ;;  %v127_v5 = vld [vmem:[#allocation2 + $0x1d0] sm:$0xff] }
  0x3e   :  { %198 = vmatpush1.msra.mxu0 %v143_v22  ;;  %1135 = vmatpush1.msra.mxu1 %v143_v22  ;;  %v87_v6 = vld [vmem:[#allocation2 + $0x90] sm:$0xff]  ;;  %v128_v7 = vld [vmem:[#allocation2 + $0x1d8] sm:$0xff]  ;;  %v129_v9 = vld [vmem:[#allocation2 + $0x1e0] sm:$0xff] }
  0x3f   :  { %199 = vmatprep.subr.mxu0 %v142_v23  ;;  %1120 = vmatprep.subr.mxu1 %v142_v23  ;;  %v88_v8 = vld [vmem:[#allocation2 + $0x98] sm:$0xff]  ;;  %v89_v10 = vld [vmem:[#allocation2 + $0xa0] sm:$0xff]  ;;  %v130_v11 = vld [vmem:[#allocation2 + $0x1e8] sm:$0xff] }
  0x40   :  { %200 = vmatpush1.msra.mxu0 %v141_v24  ;;  %1136 = vmatpush1.msra.mxu1 %v141_v24  ;;  %v90_v12 = vld [vmem:[#allocation2 + $0xa8] sm:$0xff]  ;;  %v131_v13 = vld [vmem:[#allocation2 + $0x1f0] sm:$0xff]  ;;  %v132_v15 = vld [vmem:[#allocation2 + $0x1f8] sm:$0xff] }
  0x41   :  { %201 = vmatprep.subr.mxu0 %v140_v25  ;;  %1121 = vmatprep.subr.mxu1 %v140_v25  ;;  %v91_v14 = vld [vmem:[#allocation2 + $0xb0] sm:$0xff]  ;;  %v92_v16 = vld [vmem:[#allocation2 + $0xb8] sm:$0xff]  ;;  %v93_v17 = vld [vmem:[#allocation2 + $0xc0] sm:$0xff] }
  0x42   :  { %202 = vmatpush1.msra.mxu0 %v139_v26  ;;  %1137 = vmatpush1.msra.mxu1 %v139_v26  ;;  %v94_v18 = vld [vmem:[#allocation2 + $0xc8] sm:$0xff]  ;;  %v95_v19 = vld [vmem:[#allocation2 + $0xd0] sm:$0xff]  ;;  %v96_v20 = vld [vmem:[#allocation2 + $0xd8] sm:$0xff] }
  0x43   :  { %203 = vmatprep.subr.mxu0 %v138_v27  ;;  %1122 = vmatprep.subr.mxu1 %v138_v27  ;;  %v97_v21 = vld [vmem:[#allocation2 + $0xe0] sm:$0xff]  ;;  %v98_v22 = vld [vmem:[#allocation2 + $0xe8] sm:$0xff]  ;;  %v99_v23 = vld [vmem:[#allocation2 + $0xf0] sm:$0xff] }
  0x44   :  { %204 = vmatpush1.msra.mxu0 %v137_v28  ;;  %1138 = vmatpush1.msra.mxu1 %v137_v28  ;;  %v100_v24 = vld [vmem:[#allocation2 + $0xf8] sm:$0xff]  ;;  %v101_v25 = vld [vmem:[#allocation2 + $0x100] sm:$0xff]  ;;  %v102_v26 = vld [vmem:[#allocation2 + $0x108] sm:$0xff] }
  0x45   :  { %205 = vmatprep.subr.mxu0 %v136_v29  ;;  %1123 = vmatprep.subr.mxu1 %v136_v29  ;;  %v103_v27 = vld [vmem:[#allocation2 + $0x110] sm:$0xff]  ;;  %v104_v28 = vld [vmem:[#allocation2 + $0x118] sm:$0xff]  ;;  %v105_v29 = vld [vmem:[#allocation2 + $0x120] sm:$0xff] }
  0x46   :  { %206 = vmatpush1.msra.mxu0 %v135_v30  ;;  %1139 = vmatpush1.msra.mxu1 %v135_v30  ;;  %v106_v30 = vld [vmem:[#allocation2 + $0x128] sm:$0xff] }
  0x47   :  { %207 = vmatprep.subr.mxu0 %v134_v31  ;;  %1124 = vmatprep.subr.mxu1 %v134_v31  ;;  %v107_v31 = vld [vmem:[#allocation2 + $0x130] sm:$0xff] }
  0x48   :  { %208 = vmatpush1.msra.mxu0 %v133_v32  ;;  %1140 = vmatpush1.msra.mxu1 %v133_v32  ;;  %v108_v32 = vld [vmem:[#allocation2 + $0x138] sm:$0xff] }
  0x49   :  { %242 = vmatmul.mubr.f32.vlgmr.msra.gmra.mxu0 %v69_v33  ;;  %488 = vmatmul.mubr.f32.vlgmr.msra.gmra.mxu1 %v110_v34  ;;  %v109_v33 = vld [vmem:[#allocation2 + $0x140] sm:$0xff]  ;;  %v2060_v34 = vlaneseq }
  0x4a   :  { %247 = vmatprep.mubr.f32.mxu0 %v2058_v0  ;;  %493 = vmatprep.mubr.f32.mxu1 %v2058_v0 }
  0x4d   :  { %248 = vmatmul.mubr.f32.gmra.mxu0 %v70_v35  ;;  %494 = vmatmul.mubr.f32.gmra.mxu1 %v111_v36  ;;  %v1396_v35 = vshrl.u32 %v2060_v34, 7 }
  0x4e   :  { %253 = vmatprep.mubr.f32.mxu0 %v2058_v0  ;;  %499 = vmatprep.mubr.f32.mxu1 %v2058_v0 }
  0x4f   :  { %v1399_v36 = vsub.s32 1, %v1396_v35 }
  0x51   :  { %254 = vmatmul.mubr.f32.gmra.mxu0 %v71_v37  ;;  %500 = vmatmul.mubr.f32.gmra.mxu1 %v112_v38  ;;  %v1404_v37 = vld [vmem:[%s2054_s3] sm:$0x3] }
  0x52   :  { %259 = vmatprep.mubr.f32.mxu0 %v2058_v0  ;;  %505 = vmatprep.mubr.f32.mxu1 %v2058_v0  ;;  %v1408_v38 = vrot.slane %v1404_v37, %v1399_v36 }
  0x55   :  { %260 = vmatmul.mubr.f32.gmra.mxu0 %v72_v39  ;;  %506 = vmatmul.mubr.f32.gmra.mxu1 %v113_v40 }
  0x56   :  { %265 = vmatprep.mubr.f32.mxu0 %v2058_v0  ;;  %511 = vmatprep.mubr.f32.mxu1 %v2058_v0 }
  0x59   :  { %266 = vmatmul.mubr.f32.gmra.mxu0 %v73_v41  ;;  %512 = vmatmul.mubr.f32.gmra.mxu1 %v114_v42 }
  0x5a   :  { %271 = vmatprep.mubr.f32.mxu0 %v2058_v0  ;;  %517 = vmatprep.mubr.f32.mxu1 %v2058_v0 }
  0x5d   :  { %272 = vmatmul.mubr.f32.gmra.mxu0 %v74_v43  ;;  %518 = vmatmul.mubr.f32.gmra.mxu1 %v115_v44 }
  0x5e   :  { %277 = vmatprep.mubr.f32.mxu0 %v2058_v0  ;;  %523 = vmatprep.mubr.f32.mxu1 %v2058_v0 }
  0x61   :  { %278 = vmatmul.mubr.f32.gmra.mxu0 %v75_v45  ;;  %524 = vmatmul.mubr.f32.gmra.mxu1 %v116_v46 }
  0x62   :  { %283 = vmatprep.mubr.f32.mxu0 %v2058_v0  ;;  %529 = vmatprep.mubr.f32.mxu1 %v2058_v0 }
  0x65   :  { %284 = vmatmul.mubr.f32.gmra.mxu0 %v76_v47  ;;  %530 = vmatmul.mubr.f32.gmra.mxu1 %v117_v48 }
  0x66   :  { %289 = vmatprep.mubr.f32.mxu0 %v2058_v0  ;;  %535 = vmatprep.mubr.f32.mxu1 %v2058_v0 }
  0x69   :  { %290 = vmatmul.mubr.f32.gmra.mxu0 %v77_v49  ;;  %536 = vmatmul.mubr.f32.gmra.mxu1 %v118_v50 }
  0x6a   :  { %295 = vmatprep.mubr.f32.mxu0 %v2058_v0  ;;  %541 = vmatprep.mubr.f32.mxu1 %v2058_v0 }
  0x6d   :  { %296 = vmatmul.mubr.f32.gmra.mxu0 %v78_v51  ;;  %542 = vmatmul.mubr.f32.gmra.mxu1 %v119_v52 }
  0x6e   :  { %301 = vmatprep.mubr.f32.mxu0 %v2058_v0  ;;  %547 = vmatprep.mubr.f32.mxu1 %v2058_v0 }
  0x71   :  { %302 = vmatmul.mubr.f32.gmra.mxu0 %v79_v53  ;;  %548 = vmatmul.mubr.f32.gmra.mxu1 %v120_v54 }
  0x72   :  { %307 = vmatprep.mubr.f32.mxu0 %v2058_v0  ;;  %553 = vmatprep.mubr.f32.mxu1 %v2058_v0 }
  0x75   :  { %308 = vmatmul.mubr.f32.gmra.mxu0 %v80_v55  ;;  %554 = vmatmul.mubr.f32.gmra.mxu1 %v121_v56 }
  0x76   :  { %313 = vmatprep.mubr.f32.mxu0 %v2058_v0  ;;  %559 = vmatprep.mubr.f32.mxu1 %v2058_v0 }
  0x79   :  { %314 = vmatmul.mubr.f32.gmra.mxu0 %v81_v57  ;;  %560 = vmatmul.mubr.f32.gmra.mxu1 %v122_v58 }
  0x7a   :  { %319 = vmatprep.mubr.f32.mxu0 %v2058_v0  ;;  %565 = vmatprep.mubr.f32.mxu1 %v2058_v0 }
  0x7d   :  { %320 = vmatmul.mubr.f32.gmra.mxu0 %v82_v59  ;;  %566 = vmatmul.mubr.f32.gmra.mxu1 %v123_v60 }
  0x7e   :  { %325 = vmatprep.mubr.f32.mxu0 %v2058_v0  ;;  %571 = vmatprep.mubr.f32.mxu1 %v2058_v0 }
  0x81   :  { %326 = vmatmul.mubr.f32.gmra.mxu0 %v83_v61  ;;  %572 = vmatmul.mubr.f32.gmra.mxu1 %v124_v62 }
  0x82   :  { %331 = vmatprep.mubr.f32.mxu0 %v2058_v0  ;;  %577 = vmatprep.mubr.f32.mxu1 %v2058_v0 }
  0x85   :  { %332 = vmatmul.mubr.f32.gmra.mxu0 %v84_v63  ;;  %578 = vmatmul.mubr.f32.gmra.mxu1 %v125_v1 }
  0x86   :  { %337 = vmatprep.mubr.f32.mxu0 %v2058_v0  ;;  %583 = vmatprep.mubr.f32.mxu1 %v2058_v0 }
  0x89   :  { %338 = vmatmul.mubr.f32.gmra.mxu0 %v85_v2  ;;  %584 = vmatmul.mubr.f32.gmra.mxu1 %v126_v3 }
  0x8a   :  { %343 = vmatprep.mubr.f32.mxu0 %v2058_v0  ;;  %589 = vmatprep.mubr.f32.mxu1 %v2058_v0 }
  0x8d   :  { %344 = vmatmul.mubr.f32.gmra.mxu0 %v86_v4  ;;  %590 = vmatmul.mubr.f32.gmra.mxu1 %v127_v5 }
  0x8e   :  { %349 = vmatprep.mubr.f32.mxu0 %v2058_v0  ;;  %595 = vmatprep.mubr.f32.mxu1 %v2058_v0 }
  0x91   :  { %350 = vmatmul.mubr.f32.gmra.mxu0 %v87_v6  ;;  %596 = vmatmul.mubr.f32.gmra.mxu1 %v128_v7 }
  0x92   :  { %355 = vmatprep.mubr.f32.mxu0 %v2058_v0  ;;  %601 = vmatprep.mubr.f32.mxu1 %v2058_v0 }
  0x95   :  { %356 = vmatmul.mubr.f32.gmra.mxu0 %v88_v8  ;;  %602 = vmatmul.mubr.f32.gmra.mxu1 %v129_v9 }
  0x96   :  { %361 = vmatprep.mubr.f32.mxu0 %v2058_v0  ;;  %607 = vmatprep.mubr.f32.mxu1 %v2058_v0 }
  0x99   :  { %362 = vmatmul.mubr.f32.gmra.mxu0 %v89_v10  ;;  %608 = vmatmul.mubr.f32.gmra.mxu1 %v130_v11 }
  0x9a   :  { %367 = vmatprep.mubr.f32.mxu0 %v2058_v0  ;;  %613 = vmatprep.mubr.f32.mxu1 %v2058_v0 }
  0x9d   :  { %368 = vmatmul.mubr.f32.gmra.mxu0 %v90_v12  ;;  %614 = vmatmul.mubr.f32.gmra.mxu1 %v131_v13 }
  0x9e   :  { %373 = vmatprep.mubr.f32.mxu0 %v2058_v0  ;;  %619 = vmatprep.mubr.f32.mxu1 %v2058_v0 }
  0xa1   :  { %374 = vmatmul.mubr.f32.gmra.mxu0 %v91_v14  ;;  %620 = vmatmul.mubr.f32.gmra.mxu1 %v132_v15 }
  0xa2   :  { %379 = vmatprep.mubr.f32.mxu0 %v2058_v0 }
  0xa5   :  { %380 = vmatmul.mubr.f32.gmra.mxu0 %v92_v16 }
  0xa6   :  { %385 = vmatprep.mubr.f32.mxu0 %v2058_v0 }
  0xa9   :  { %386 = vmatmul.mubr.f32.gmra.mxu0 %v93_v17 }
  0xaa   :  { %391 = vmatprep.mubr.f32.mxu0 %v2058_v0 }
  0xad   :  { %392 = vmatmul.mubr.f32.gmra.mxu0 %v94_v18 }
  0xae   :  { %397 = vmatprep.mubr.f32.mxu0 %v2058_v0 }
  0xb1   :  { %398 = vmatmul.mubr.f32.gmra.mxu0 %v95_v19 }
  0xb2   :  { %403 = vmatprep.mubr.f32.mxu0 %v2058_v0 }
  0xb5   :  { %404 = vmatmul.mubr.f32.gmra.mxu0 %v96_v20 }
  0xb6   :  { %409 = vmatprep.mubr.f32.mxu0 %v2058_v0 }
  0xb9   :  { %410 = vmatmul.mubr.f32.gmra.mxu0 %v97_v21 }
  0xba   :  { %415 = vmatprep.mubr.f32.mxu0 %v2058_v0 }
  0xbd   :  { %416 = vmatmul.mubr.f32.gmra.mxu0 %v98_v22 }
  0xbe   :  { %421 = vmatprep.mubr.f32.mxu0 %v2058_v0 }
  0xc1   :  { %422 = vmatmul.mubr.f32.gmra.mxu0 %v99_v23 }
  0xc2   :  { %427 = vmatprep.mubr.f32.mxu0 %v2058_v0 }
  0xc5   :  { %428 = vmatmul.mubr.f32.gmra.mxu0 %v100_v24 }
  0xc6   :  { %433 = vmatprep.mubr.f32.mxu0 %v2058_v0 }
  0xc9   :  { %434 = vmatmul.mubr.f32.gmra.mxu0 %v101_v25 }
  0xca   :  { %439 = vmatprep.mubr.f32.mxu0 %v2058_v0 }
  0xcd   :  { %440 = vmatmul.mubr.f32.gmra.mxu0 %v102_v26 }
  0xce   :  { %445 = vmatprep.mubr.f32.mxu0 %v2058_v0 }
  0xd1   :  { %446 = vmatmul.mubr.f32.gmra.mxu0 %v103_v27 }
  0xd2   :  { %451 = vmatprep.mubr.f32.mxu0 %v2058_v0 }
  0xd5   :  { %452 = vmatmul.mubr.f32.gmra.mxu0 %v104_v28 }
  0xd6   :  { %457 = vmatprep.mubr.f32.mxu0 %v2058_v0 }
  0xd9   :  { %458 = vmatmul.mubr.f32.gmra.mxu0 %v105_v29 }
  0xda   :  { %463 = vmatprep.mubr.f32.mxu0 %v2058_v0 }
  0xdd   :  { %464 = vmatmul.mubr.f32.gmra.mxu0 %v106_v30 }
  0xde   :  { %469 = vmatprep.mubr.f32.mxu0 %v2058_v0 }
  0xe1   :  { %470 = vmatmul.mubr.f32.gmra.mxu0 %v107_v31 }
  0xe2   :  { %475 = vmatprep.mubr.f32.mxu0 %v2058_v0 }
  0xe5   :  { %476 = vmatmul.mubr.f32.gmra.mxu0 %v108_v32  ;;  %v2061_v32 = vsub.s32 0, %v1396_v35 }
  0xe6   :  { %481 = vmatprep.mubr.f32.mxu0 %v2058_v0 }
  0xe9   :  { %482 = vmatmul.mubr.f32.gmra.mxu0 %v109_v33 }
 0x109   :  { %v1410_v39 = vpop.f32.mrf.mxu0  ;;  %v1423_v46 = vpop.f32.mrf.mxu1 }
 0x10a   :  { %2079 = vst [vmem:[#allocation15_spill] sm:$0xff] %v1423_v46 }
 0x10b   :  { %v245_v40 = vpop.f32.mrf.mxu0  ;;  %v1431_v50 = vpop.f32.mrf.mxu1 }
 0x10c   :  { %v1413_v41 = vadd.f32 %v245_v40, %v1408_v38 }
 0x10d   :  { %v1415_v42 = vpop.f32.mrf.mxu0  ;;  %v1439_v54 = vpop.f32.mrf.mxu1 }
 0x10e   :  { %626 = vxpose.xlu0.b32.start [1/16] (narrow) %v1413_v41, 8  ;;  %2080 = vst [vmem:[#allocation16_spill] sm:$0xff] %v1439_v54 }
 0x10f   :  { %v251_v43 = vpop.f32.mrf.mxu0  ;;  %v1447_v58 = vpop.f32.mrf.mxu1 }
 0x110   :  { %v1419_v44 = vadd.f32 %v251_v43, %v1408_v38 }
 0x111   :  { %v1421_v45 = vpop.f32.mrf.mxu0  ;;  %v1455_v62 = vpop.f32.mrf.mxu1 }
 0x112   :  { %627 = vxpose.xlu0.b32.cont [2/16] (narrow) %v1419_v44, 8 }
 0x113   :  { %v257_v47 = vpop.f32.mrf.mxu0  ;;  %v1463_v3 = vpop.f32.mrf.mxu1 }
 0x114   :  { %v1427_v48 = vadd.f32 %v257_v47, %v1408_v38 }
 0x115   :  { %v1429_v49 = vpop.f32.mrf.mxu0  ;;  %v1471_v7 = vpop.f32.mrf.mxu1 }
 0x116   :  { %628 = vxpose.xlu0.b32.cont [3/16] (narrow) %v1427_v48, 8 }
 0x117   :  { %v263_v51 = vpop.f32.mrf.mxu0  ;;  %v1479_v11 = vpop.f32.mrf.mxu1 }
 0x118   :  { %v1435_v52 = vadd.f32 %v263_v51, %v1408_v38  ;;  %v1507_v51 = vrot.slane %v1404_v37, %v2061_v32 }
 0x119   :  { %v1437_v53 = vpop.f32.mrf.mxu0  ;;  %v1485_v15 = vpop.f32.mrf.mxu1 }
 0x11a   :  { %629 = vxpose.xlu0.b32.cont [4/16] (narrow) %v1435_v52, 8 }
 0x11b   :  { %v269_v55 = vpop.f32.mrf.mxu0  ;;  %v1489_v19 = vpop.f32.mrf.mxu1 }
 0x11c   :  { %v1443_v56 = vadd.f32 %v269_v55, %v1408_v38 }
 0x11d   :  { %v1445_v57 = vpop.f32.mrf.mxu0  ;;  %v1492_v23 = vpop.f32.mrf.mxu1 }
 0x11e   :  { %630 = vxpose.xlu0.b32.cont [5/16] (narrow) %v1443_v56, 8 }
 0x11f   :  { %v275_v59 = vpop.f32.mrf.mxu0  ;;  %v1495_v27 = vpop.f32.mrf.mxu1 }
 0x120   :  { %v1451_v60 = vadd.f32 %v275_v59, %v1408_v38 }
 0x121   :  { %v1453_v61 = vpop.f32.mrf.mxu0  ;;  %v1498_v31 = vpop.f32.mrf.mxu1 }
 0x122   :  { %631 = vxpose.xlu0.b32.cont [6/16] (narrow) %v1451_v60, 8 }
 0x123   :  { %v281_v63 = vpop.f32.mrf.mxu0  ;;  %v1502_v47 = vpop.f32.mrf.mxu1 }
 0x124   :  { %v1459_v1 = vadd.f32 %v281_v63, %v1408_v38 }
 0x125   :  { %v1461_v2 = vpop.f32.mrf.mxu0 }
 0x126   :  { %632 = vxpose.xlu0.b32.cont [7/16] (narrow) %v1459_v1, 8 }
 0x127   :  { %v287_v4 = vpop.f32.mrf.mxu0 }
 0x128   :  { %v1467_v5 = vadd.f32 %v287_v4, %v1408_v38 }
 0x129   :  { %v1469_v6 = vpop.f32.mrf.mxu0 }
 0x12a   :  { %633 = vxpose.xlu0.b32.cont [8/16] (narrow) %v1467_v5, 8 }
 0x12b   :  { %v293_v8 = vpop.f32.mrf.mxu0 }
 0x12c   :  { %v1475_v9 = vadd.f32 %v293_v8, %v1408_v38  ;;  %v1513_v8 = vpop.f32.mrf.mxu1 }
 0x12d   :  { %v1477_v10 = vpop.f32.mrf.mxu0  ;;  %2081 = vst [vmem:[#allocation17_spill] sm:$0xff] %v1513_v8 }
 0x12e   :  { %634 = vxpose.xlu0.b32.cont [9/16] (narrow) %v1475_v9, 8 }
 0x12f   :  { %v299_v12 = vpop.f32.mrf.mxu0 }
 0x130   :  { %v1483_v13 = vadd.f32 %v299_v12, %v1408_v38 }
 0x131   :  { %v303_v14 = vpop.f32.mrf.mxu0 }
 0x132   :  { %635 = vxpose.xlu0.b32.cont [10/16] (narrow) %v1483_v13, 8 }
 0x133   :  { %v305_v16 = vpop.f32.mrf.mxu0 }
 0x134   :  { %v306_v17 = vadd.f32 %v305_v16, %v1408_v38 }
 0x135   :  { %v309_v18 = vpop.f32.mrf.mxu0 }
 0x136   :  { %636 = vxpose.xlu0.b32.cont [11/16] (narrow) %v306_v17, 8 }
 0x137   :  { %v311_v20 = vpop.f32.mrf.mxu0 }
 0x138   :  { %v312_v21 = vadd.f32 %v311_v20, %v1408_v38 }
 0x139   :  { %v315_v22 = vpop.f32.mrf.mxu0 }
 0x13a   :  { %637 = vxpose.xlu0.b32.cont [12/16] (narrow) %v312_v21, 8 }
 0x13b   :  { %v317_v24 = vpop.f32.mrf.mxu0 }
 0x13c   :  { %v318_v25 = vadd.f32 %v317_v24, %v1408_v38 }
 0x13d   :  { %v321_v26 = vpop.f32.mrf.mxu0 }
 0x13e   :  { %638 = vxpose.xlu0.b32.cont [13/16] (narrow) %v318_v25, 8  ;;  %v322_v37 = vadd.f32 %v321_v26, %v1507_v51 }
 0x13f   :  { %v323_v28 = vpop.f32.mrf.mxu0 }
 0x140   :  { %v324_v29 = vadd.f32 %v323_v28, %v1408_v38  ;;  %v1522_v28 = vpop.f32.mrf.mxu1 }
 0x141   :  { %v327_v30 = vpop.f32.mrf.mxu0 }
 0x142   :  { %639 = vxpose.xlu0.b32.cont [14/16] (narrow) %v324_v29, 8  ;;  %v328_v12 = vadd.f32 %v327_v30, %v1507_v51  ;;  %v1532_v26 = vpop.f32.mrf.mxu1 }
 0x143   :  { %v329_v33 = vpop.f32.mrf.mxu0  ;;  %2082 = vst [vmem:[#allocation18_spill] sm:$0xff] %v1532_v26 }
 0x144   :  { %v330_v40 = vadd.f32 %v329_v33, %v1408_v38  ;;  %v316_v33 = vadd.f32 %v315_v22, %v1507_v51 }
 0x145   :  { %v333_v43 = vpop.f32.mrf.mxu0 }
 0x146   :  { %640 = vxpose.xlu0.b32.cont [15/16] (narrow) %v330_v40, 8  ;;  %v334_v63 = vadd.f32 %v333_v43, %v1507_v51 }
 0x147   :  { %v335_v55 = vpop.f32.mrf.mxu0 }
 0x148   :  { %v336_v59 = vadd.f32 %v335_v55, %v1408_v38 }
 0x149   :  { %v1511_v4 = vpop.f32.mrf.mxu0 }
 0x14a   :  { %891 = vmatprep.subr.mxu1 %v336_v59  ;;  %641 = vxpose.xlu0.b32.end [16/16] (narrow) %v336_v59, 8 }
 0x14b   :  { %v341_v16 = vpop.f32.mrf.mxu0  ;;  %892 = vmatpush1.msra.mxu1 %v334_v63  ;;  %v1543_v63 = vpop.f32.mrf.mxu1 }
 0x14c   :  { %v1517_v20 = vadd.f32 %v341_v16, %v1408_v38  ;;  %893 = vmatprep.subr.mxu1 %v330_v40  ;;  %v310_v40 = vadd.f32 %v309_v18, %v1507_v51 }
 0x14d   :  { %v1520_v24 = vpop.f32.mrf.mxu0  ;;  %894 = vmatpush1.msra.mxu1 %v328_v12  ;;  %v1557_v16 = vpop.f32.mrf.mxu1 }
 0x14e   :  { %658 = vxpose.xlu1.b32.start [1/16] (narrow) %v1517_v20, 8  ;;  %895 = vmatprep.subr.mxu1 %v324_v29  ;;  %v304_v29 = vadd.f32 %v303_v14, %v1507_v51  ;;  %v292_v14 = vadd.f32 %v1469_v6, %v1507_v51  ;;  %2083 = vst [vmem:[#allocation19_spill] sm:$0xff] %v1557_v16 }
 0x14f   :  { %v347_v43 = vpop.f32.mrf.mxu0  ;;  %896 = vmatpush1.msra.mxu1 %v322_v37  ;;  %v280_v6 = vadd.f32 %v1453_v61, %v1507_v51  ;;  %v268_v61 = vadd.f32 %v1437_v53, %v1507_v51  ;;  %v256_v53 = vadd.f32 %v1421_v45, %v1507_v51  ;;  %v244_v45 = vadd.f32 %v1410_v39, %v1507_v51 }
 0x150   :  { %v1527_v30 = vadd.f32 %v347_v43, %v1408_v38  ;;  %897 = vmatprep.subr.mxu1 %v318_v25  ;;  %v298_v25 = vadd.f32 %v1477_v10, %v1507_v51  ;;  %v286_v10 = vadd.f32 %v1461_v2, %v1507_v51  ;;  %v274_v2 = vadd.f32 %v1445_v57, %v1507_v51 }
 0x151   :  { %v1530_v55 = vpop.f32.mrf.mxu0  ;;  %898 = vmatpush1.msra.mxu1 %v316_v33  ;;  %v1571_v33 = vpop.f32.mrf.mxu1  ;;  %v262_v57 = vadd.f32 %v1429_v49, %v1507_v51  ;;  %v250_v49 = vadd.f32 %v1415_v42, %v1507_v51 }
 0x152   :  { %659 = vxpose.xlu1.b32.cont [2/16] (narrow) %v1527_v30, 8  ;;  %899 = vmatprep.subr.mxu1 %v312_v21 }
 0x153   :  { %v353_v59 = vpop.f32.mrf.mxu0  ;;  %900 = vmatpush1.msra.mxu1 %v310_v40  ;;  %v1585_v40 = vpop.f32.mrf.mxu1 }
 0x154   :  { %v1537_v22 = vadd.f32 %v353_v59, %v1408_v38  ;;  %901 = vmatprep.subr.mxu1 %v306_v17  ;;  %2084 = vst [vmem:[#allocation20_spill] sm:$0xff] %v1585_v40 }
 0x155   :  { %v1541_v18 = vpop.f32.mrf.mxu0  ;;  %902 = vmatpush1.msra.mxu1 %v304_v29  ;;  %v1599_v59 = vpop.f32.mrf.mxu1 }
 0x156   :  { %660 = vxpose.xlu1.b32.cont [3/16] (narrow) %v1537_v22, 8  ;;  %903 = vmatprep.subr.mxu1 %v1483_v13 }
 0x157   :  { %v359_v21 = vpop.f32.mrf.mxu0  ;;  %904 = vmatpush1.msra.mxu1 %v298_v25 }
 0x158   :  { %v1550_v12 = vadd.f32 %v359_v21, %v1408_v38  ;;  %905 = vmatprep.subr.mxu1 %v1475_v9 }
 0x159   :  { %v1555_v17 = vpop.f32.mrf.mxu0  ;;  %906 = vmatpush1.msra.mxu1 %v292_v14 }
 0x15a   :  { %661 = vxpose.xlu1.b32.cont [4/16] (narrow) %v1550_v12, 8  ;;  %907 = vmatprep.subr.mxu1 %v1467_v5 }
 0x15b   :  { %v365_v13 = vpop.f32.mrf.mxu0  ;;  %908 = vmatpush1.msra.mxu1 %v286_v10 }
 0x15c   :  { %v1564_v37 = vadd.f32 %v365_v13, %v1408_v38  ;;  %909 = vmatprep.subr.mxu1 %v1459_v1 }
 0x15d   :  { %v1569_v9 = vpop.f32.mrf.mxu0  ;;  %910 = vmatpush1.msra.mxu1 %v280_v6 }
 0x15e   :  { %662 = vxpose.xlu1.b32.cont [5/16] (narrow) %v1564_v37, 8  ;;  %911 = vmatprep.subr.mxu1 %v1451_v60 }
 0x15f   :  { %v371_v5 = vpop.f32.mrf.mxu0  ;;  %912 = vmatpush1.msra.mxu1 %v274_v2 }
 0x160   :  { %v1578_v43 = vadd.f32 %v371_v5, %v1408_v38  ;;  %913 = vmatprep.subr.mxu1 %v1443_v56 }
 0x161   :  { %v1583_v1 = vpop.f32.mrf.mxu0  ;;  %914 = vmatpush1.msra.mxu1 %v268_v61 }
 0x162   :  { %663 = vxpose.xlu1.b32.cont [6/16] (narrow) %v1578_v43, 8  ;;  %915 = vmatprep.subr.mxu1 %v1435_v52 }
 0x163   :  { %v377_v60 = vpop.f32.mrf.mxu0  ;;  %916 = vmatpush1.msra.mxu1 %v262_v57 }
 0x164   :  { %v1592_v29 = vadd.f32 %v377_v60, %v1408_v38  ;;  %917 = vmatprep.subr.mxu1 %v1427_v48  ;;  %v1611_v48 = vpop.f32.mrf.mxu1 }
 0x165   :  { %v1597_v56 = vpop.f32.mrf.mxu0  ;;  %918 = vmatpush1.msra.mxu1 %v256_v53  ;;  %2085 = vst [vmem:[#allocation21_spill] sm:$0xff] %v1611_v48 }
 0x166   :  { %664 = vxpose.xlu1.b32.cont [7/16] (narrow) %v1592_v29, 8  ;;  %919 = vmatprep.subr.mxu1 %v1419_v44  ;;  %v1619_v39 = vpop.f32.mrf.mxu1 }
 0x167   :  { %v383_v52 = vpop.f32.mrf.mxu0  ;;  %920 = vmatpush1.msra.mxu1 %v250_v49 }
 0x168   :  { %v1606_v25 = vadd.f32 %v383_v52, %v1408_v38  ;;  %921 = vmatprep.subr.mxu1 %v1413_v41  ;;  %v1627_v13 = vpop.f32.mrf.mxu1 }
 0x169   :  { %v1609_v42 = vpop.f32.mrf.mxu0  ;;  %922 = vmatpush1.msra.mxu1 %v244_v45  ;;  %2086 = vst [vmem:[#allocation22_spill] sm:$0xff] %v1627_v13 }
 0x16a   :  { %665 = vxpose.xlu1.b32.cont [8/16] (narrow) %v1606_v25, 8  ;;  %v1633_v57 = vpop.f32.mrf.mxu1 }
 0x16b   :  { %v389_v14 = vpop.f32.mrf.mxu0 }
 0x16c   :  { %v1615_v44 = vadd.f32 %v389_v14, %v1408_v38  ;;  %v1637_v45 = vpop.f32.mrf.mxu1 }
 0x16d   :  { %v1617_v21 = vpop.f32.mrf.mxu0  ;;  %2087 = vst [vmem:[#allocation23_spill] sm:$0xff] %v1637_v45 }
 0x16e   :  { %666 = vxpose.xlu1.b32.cont [9/16] (narrow) %v1615_v44, 8  ;;  %v1640_v0 = vpop.f32.mrf.mxu1 }
 0x16f   :  { %v395_v10 = vpop.f32.mrf.mxu0 }
 0x170   :  { %v1623_v41 = vadd.f32 %v395_v10, %v1408_v38  ;;  %v1643_v8 = vpop.f32.mrf.mxu1 }
 0x171   :  { %v1625_v6 = vpop.f32.mrf.mxu0  ;;  %2088 = vst [vmem:[#allocation24_spill] sm:$0xff] %v1643_v8 }
 0x172   :  { %667 = vxpose.xlu1.b32.cont [10/16] (narrow) %v1623_v41, 8  ;;  %v1646_v40 = vpop.f32.mrf.mxu1 }
 0x173   :  { %v401_v2 = vpop.f32.mrf.mxu0 }
 0x174   :  { %v1631_v61 = vadd.f32 %v401_v2, %v1408_v38  ;;  %v1652_v46 = vpop.f32.mrf.mxu1 }
 0x175   :  { %v405_v5 = vpop.f32.mrf.mxu0  ;;  %2089 = vst [vmem:[#allocation25_spill] sm:$0xff] %v1652_v46 }
 0x176   :  { %668 = vxpose.xlu1.b32.cont [11/16] (narrow) %v1631_v61, 8 }
 0x177   :  { %v407_v53 = vpop.f32.mrf.mxu0 }
 0x178   :  { %v408_v60 = vadd.f32 %v407_v53, %v1408_v38 }
 0x179   :  { %v411_v49 = vpop.f32.mrf.mxu0 }
 0x17a   :  { %669 = vxpose.xlu1.b32.cont [12/16] (narrow) %v408_v60, 8 }
 0x17b   :  { %v413_v52 = vpop.f32.mrf.mxu0 }
 0x17c   :  { %v414_v14 = vadd.f32 %v413_v52, %v1408_v38 }
 0x17d   :  { %v417_v10 = vpop.f32.mrf.mxu0 }
 0x17e   :  { %670 = vxpose.xlu1.b32.cont [13/16] (narrow) %v414_v14, 8  ;;  %v418_v46 = vadd.f32 %v417_v10, %v1507_v51 }
 0x17f   :  { %v419_v2 = vpop.f32.mrf.mxu0 }
 0x180   :  { %v420_v34 = vadd.f32 %v419_v2, %v1408_v38 }
 0x181   :  { %v423_v32 = vpop.f32.mrf.mxu0 }
 0x182   :  { %671 = vxpose.xlu1.b32.cont [14/16] (narrow) %v420_v34, 8  ;;  %v424_v2 = vadd.f32 %v423_v32, %v1507_v51 }
 0x183   :  { %v425_v26 = vpop.f32.mrf.mxu0 }
 0x184   :  { %v426_v53 = vadd.f32 %v425_v26, %v1408_v38  ;;  %v1657_v26 = vadd.f32 %v1522_v28, %v1408_v38  ;;  %v412_v28 = vadd.f32 %v411_v49, %v1507_v51 }
 0x185   :  { %v429_v16 = vpop.f32.mrf.mxu0 }
 0x186   :  { %672 = vxpose.xlu1.b32.cont [15/16] (narrow) %v426_v53, 8  ;;  %v430_v13 = vadd.f32 %v429_v16, %v1507_v51  ;;  %2090 = vst [vmem:[#allocation26_spill] sm:$0xff] %v1657_v26  ;;  %v1664_v16 = vpop.f32.mrf.mxu1 }
 0x187   :  { %v431_v48 = vpop.f32.mrf.mxu0 }
 0x188   :  { %v432_v52 = vadd.f32 %v431_v48, %v1408_v38  ;;  %v1679_v10 = vpop.f32.mrf.mxu1 }
 0x189   :  { %v1650_v45 = vpop.f32.mrf.mxu0  ;;  %2092 = vst [vmem:[#allocation28_spill] sm:$0xff] %v1679_v10 }
 0x18a   :  { %673 = vxpose.xlu1.b32.end [16/16] (narrow) %v432_v52, 8  ;;  %923 = vmatprep.subr.mxu1 %v432_v52  ;;  %v406_v52 = vadd.f32 %v405_v5, %v1507_v51  ;;  %v1282_v5 = vmov -1e+30  }
 0x18b   :  { %v437_v8 = vpop.f32.mrf.mxu0  ;;  %924 = vmatpush2.msra.mxu1 %v430_v13  ;;  %68 = vst.msk [vmem:[%s2057_s6] sm:$0xff] %vm67_vm0, %v1282_v5 }
 0x18c   :  { %v1660_v54 = vadd.f32 %v437_v8, %v1408_v38  ;;  %925 = vmatprep.subr.mxu1 %v426_v53  ;;  %v1672_v8 = vadd.f32 %v1543_v63, %v1408_v38  ;;  %v400_v63 = vadd.f32 %v1625_v6, %v1507_v51 }
 0x18d   :  { %v1662_v48 = vpop.f32.mrf.mxu0  ;;  %926 = vmatpush2.msra.mxu1 %v424_v2  ;;  %v388_v2 = vadd.f32 %v1609_v42, %v1507_v51  ;;  %v376_v42 = vadd.f32 %v1583_v1, %v1507_v51 }
 0x18e   :  { %722 = vxpose.xlu1.b32.start [1/16] (narrow) %v1657_v26, 8  ;;  %690 = vxpose.xlu0.b32.start [1/16] (narrow) %v1660_v54, 8  ;;  %2091 = vst [vmem:[#allocation27_spill] sm:$0xff] %v1672_v8  ;;  %v1875_v26 = vpop.trf.xlu0 }
 0x18f   :  { %927 = vmatprep.subr.mxu1 %v420_v34  ;;  %v443_v32 = vpop.f32.mrf.mxu0 }
 0x190   :  { %v1675_v13 = vadd.f32 %v443_v32, %v1408_v38  ;;  %928 = vmatpush2.msra.mxu1 %v418_v46  ;;  %v1688_v46 = vadd.f32 %v1571_v33, %v1408_v38  ;;  %v394_v33 = vadd.f32 %v1617_v21, %v1507_v51 }
 0x191   :  { %929 = vmatprep.subr.mxu1 %v414_v14  ;;  %v1677_v53 = vpop.f32.mrf.mxu0  ;;  %v1700_v14 = vpop.f32.mrf.mxu1 }
 0x192   :  { %930 = vmatpush2.msra.mxu1 %v412_v28  ;;  %723 = vxpose.xlu1.b32.cont [2/16] (narrow) %v1672_v8, 8  ;;  %2093 = vst [vmem:[#allocation29_spill] sm:$0xff] %v1688_v46  ;;  %v2113_v8 = vsub.s32 0, %v1396_v35 }
 0x193   :  { %691 = vxpose.xlu0.b32.cont [2/16] (narrow) %v1675_v13, 8  ;;  %931 = vmatprep.subr.mxu1 %v408_v60  ;;  %v449_v34 = vpop.f32.mrf.mxu0  ;;  %v1719_v28 = vpop.f32.mrf.mxu1 }
 0x194   :  { %v1691_v49 = vadd.f32 %v449_v34, %v1408_v38  ;;  %932 = vmatpush2.msra.mxu1 %v406_v52  ;;  %2095 = vst [vmem:[#allocation31_spill] sm:$0xff] %v1719_v28 }
 0x195   :  { %933 = vmatprep.subr.mxu1 %v1631_v61  ;;  %v1698_v60 = vpop.f32.mrf.mxu0  ;;  %v1711_v61 = vadd.f32 %v1599_v59, %v1408_v38  ;;  %v593_v34 = vpop.f32.mrf.mxu1 }
 0x196   :  { %934 = vmatpush2.msra.mxu1 %v400_v63  ;;  %724 = vxpose.xlu1.b32.cont [3/16] (narrow) %v1688_v46, 8 }
 0x197   :  { %692 = vxpose.xlu0.b32.cont [3/16] (narrow) %v1691_v49, 8  ;;  %935 = vmatprep.subr.mxu1 %v1623_v41  ;;  %v455_v6 = vpop.f32.mrf.mxu0  ;;  %2094 = vst [vmem:[#allocation30_spill] sm:$0xff] %v1711_v61  ;;  %v382_v41 = vadd.f32 %v1597_v56, %v1507_v51  ;;  %v1755_v5 = vpop.f32.mrf.mxu1 }
 0x198   :  { %v1714_v32 = vadd.f32 %v455_v6, %v1408_v38  ;;  %936 = vmatpush2.msra.mxu1 %v394_v33  ;;  %2098 = vst [vmem:[#allocation34_spill] sm:$0xff] %v1755_v5 }
 0x199   :  { %937 = vmatprep.subr.mxu1 %v1615_v44  ;;  %v1717_v21 = vpop.f32.mrf.mxu0  ;;  %v1730_v44 = vadd.f32 %v1619_v39, %v1408_v38  ;;  %v364_v39 = vadd.f32 %v1555_v17, %v1507_v51  ;;  %v599_v6 = vpop.f32.mrf.mxu1 }
 0x19a   :  { %938 = vmatpush2.msra.mxu1 %v388_v2  ;;  %725 = vxpose.xlu1.b32.cont [4/16] (narrow) %v1711_v61, 8 }
 0x19b   :  { %693 = vxpose.xlu0.b32.cont [4/16] (narrow) %v1714_v32, 8  ;;  %939 = vmatprep.subr.mxu1 %v1606_v25  ;;  %v461_v59 = vpop.f32.mrf.mxu0  ;;  %2096 = vst [vmem:[#allocation32_spill] sm:$0xff] %v1730_v44  ;;  %v370_v25 = vadd.f32 %v1569_v9, %v1507_v51 }
 0x19c   :  { %v1733_v52 = vadd.f32 %v461_v59, %v1408_v38  ;;  %940 = vmatpush2.msra.mxu1 %v382_v41 }
 0x19d   :  { %941 = vmatprep.subr.mxu1 %v1592_v29  ;;  %v1736_v56 = vpop.f32.mrf.mxu0  ;;  %v1747_v29 = vadd.f32 %v1633_v57, %v1408_v38  ;;  %v352_v57 = vadd.f32 %v1530_v55, %v1507_v51  ;;  %v340_v55 = vadd.f32 %v1511_v4, %v1507_v51 }
 0x19e   :  { %942 = vmatpush2.msra.mxu1 %v376_v42  ;;  %726 = vxpose.xlu1.b32.cont [5/16] (narrow) %v1730_v44, 8  ;;  %v1812_v42 = vadd.f32 %v1431_v50, %v1408_v38  ;;  %v1828_v50 = vadd.f32 %v599_v6, %v1408_v38 }
 0x19f   :  { %694 = vxpose.xlu0.b32.cont [5/16] (narrow) %v1733_v52, 8  ;;  %943 = vmatprep.subr.mxu1 %v1578_v43  ;;  %v467_v1 = vpop.f32.mrf.mxu0  ;;  %2097 = vst [vmem:[#allocation33_spill] sm:$0xff] %v1747_v29  ;;  %v358_v43 = vadd.f32 %v1541_v18, %v1507_v51 }
 0x1a0   :  { %v1750_v63 = vadd.f32 %v467_v1, %v1408_v38  ;;  %944 = vmatpush2.msra.mxu1 %v370_v25  ;;  %v1823_v1 = vadd.f32 %v1447_v58, %v1408_v38  ;;  %2106 = vst [vmem:[#allocation42_spill] sm:$0xff] %v1828_v50 }
 0x1a1   :  { %945 = vmatprep.subr.mxu1 %v1564_v37  ;;  %v1753_v9 = vpop.f32.mrf.mxu0  ;;  %v1766_v37 = vadd.f32 %v1640_v0, %v1408_v38 }
 0x1a2   :  { %946 = vmatpush2.msra.mxu1 %v364_v39  ;;  %727 = vxpose.xlu1.b32.cont [6/16] (narrow) %v1747_v29, 8 }
 0x1a3   :  { %695 = vxpose.xlu0.b32.cont [6/16] (narrow) %v1750_v63, 8  ;;  %947 = vmatprep.subr.mxu1 %v1550_v12  ;;  %v473_v17 = vpop.f32.mrf.mxu0  ;;  %2099 = vst [vmem:[#allocation35_spill] sm:$0xff] %v1766_v37  ;;  %v346_v12 = vadd.f32 %v1520_v24, %v1507_v51  ;;  %v528_v24 = vadd.f32 %v1502_v47, %v1408_v38 }
 0x1a4   :  { %v1769_v33 = vadd.f32 %v473_v17, %v1408_v38  ;;  %948 = vmatpush2.msra.mxu1 %v358_v43 }
 0x1a5   :  { %949 = vmatprep.subr.mxu1 %v1537_v22  ;;  %v1772_v18 = vpop.f32.mrf.mxu0  ;;  %v1783_v22 = vadd.f32 %v1646_v40, %v1408_v38  ;;  %v1799_v40 = vadd.f32 %v1664_v16, %v1408_v38  ;;  %v1819_v16 = vadd.f32 %v593_v34, %v1408_v38  ;;  %v1843_v34 = vadd.f32 %v1479_v11, %v1408_v38 }
 0x1a6   :  { %950 = vmatpush2.msra.mxu1 %v352_v57  ;;  %728 = vxpose.xlu1.b32.cont [7/16] (narrow) %v1766_v37, 8  ;;  %v1852_v57 = vadd.f32 %v1489_v19, %v1408_v38 }
 0x1a7   :  { %696 = vxpose.xlu0.b32.cont [7/16] (narrow) %v1769_v33, 8  ;;  %951 = vmatprep.subr.mxu1 %v1527_v30  ;;  %v479_v0 = vpop.f32.mrf.mxu0  ;;  %2100 = vst [vmem:[#allocation36_spill] sm:$0xff] %v1783_v22  ;;  %v1793_v30 = vpop.f32.mrf.mxu1  ;;  %2102 = vst [vmem:[#allocation38_spill] sm:$0xff] %v1799_v40 }
 0x1a8   :  { %v1786_v2 = vadd.f32 %v479_v0, %v1408_v38  ;;  %952 = vmatpush2.msra.mxu1 %v346_v12  ;;  %2101 = vst [vmem:[#allocation37_spill] sm:$0xff] %v1793_v30  ;;  %2105 = vst [vmem:[#allocation41_spill] sm:$0xff] %v1819_v16  ;;  %v1863_v12 = vadd.f32 %v1495_v27, %v1408_v38  ;;  %v2117_v30 = vlaneseq }
 0x1a9   :  { %953 = vmatprep.subr.mxu1 %v1517_v20  ;;  %v1791_v41 = vpop.f32.mrf.mxu0  ;;  %v605_v47 = vpop.f32.mrf.mxu1  ;;  %v1808_v20 = vadd.f32 %v1700_v14, %v1408_v38  ;;  %v1832_v14 = vadd.f32 %v1463_v3, %v1408_v38 }
 0x1aa   :  { %954 = vmatpush2.msra.mxu1 %v340_v55  ;;  %729 = vxpose.xlu1.b32.cont [8/16] (narrow) %v1783_v22, 8  ;;  %v1839_v58 = vadd.f32 %v605_v47, %v1408_v38  ;;  %v1283_v55 = vmov 1966171168   ;;  %v754_v47 = vld [vmem:[#allocation5] sm:$0xf]  ;;  %vm1068_vm5 = vcmp.lt.s32.totalorder %v2117_v30, 512 }
 0x1ab   :  { %697 = vxpose.xlu0.b32.cont [8/16] (narrow) %v1786_v2, 8  ;;  %962 = vmatprep.subr.mxu1 %v528_v24  ;;  %v485_v4 = vpop.f32.mrf.mxu0  ;;  %2103 = vst [vmem:[#allocation39_spill] sm:$0xff] %v1808_v20  ;;  %v1814_v25 = vpop.f32.mrf.mxu1  ;;  %v760_v46 = vrot.slane %v754_v47, %v2113_v8 }
 0x1ac   :  { %v1802_v59 = vadd.f32 %v485_v4, %v1408_v38  ;;  %2104 = vst [vmem:[#allocation40_spill] sm:$0xff] %v1814_v25  ;;  %2108 = vst [vmem:[#allocation44_spill] sm:$0xff] %v1839_v58  ;;  %v1044_v4 = vunpack.c.l.s4 %v1283_v55  ;;  %v788_v55 = vrot.slane %v1875_v26, %v1399_v36 }
 0x1ad   :  { %v611_v39 = vpop.f32.mrf.mxu1  ;;  %vm773_vm1 = vcmp.eq.s32.totalorder %v1396_v35, %v760_v46 }
 0x1ae   :  { %730 = vxpose.xlu1.b32.cont [9/16] (narrow) %v1799_v40, 8  ;;  %v1848_v3 = vadd.f32 %v611_v39, %v1408_v38  ;;  %v771_v39 = vsub.s32 3, %v1396_v35  ;;  %v801_v37 = vsel %vm773_vm1, %v788_v55, -1e+30  ;;  %v1284_v55 = vmov 0  }
 0x1af   :  { %698 = vxpose.xlu0.b32.cont [9/16] (narrow) %v1802_v59, 8  ;;  %v1834_v43 = vpop.f32.mrf.mxu1 }
 0x1b0   :  { %2107 = vst [vmem:[#allocation43_spill] sm:$0xff] %v1834_v43  ;;  %2109 = vst [vmem:[#allocation45_spill] sm:$0xff] %v1848_v3  ;;  %v772_v61 = vrot.slane %v754_v47, %v771_v39 }
 0x1b1   :  { %v617_v17 = vpop.f32.mrf.mxu1 }
 0x1b2   :  { %731 = vxpose.xlu1.b32.cont [10/16] (narrow) %v1808_v20, 8  ;;  %v1859_v11 = vadd.f32 %v617_v17, %v1408_v38  ;;  %v767_v17 = vsub.s32 2, %v1396_v35  ;;  %vm776_vm3 = vcmp.eq.s32.totalorder %v1396_v35, %v772_v61 }
 0x1b3   :  { %699 = vxpose.xlu0.b32.cont [10/16] (narrow) %v1812_v42, 8  ;;  %v1854_v6 = vpop.f32.mrf.mxu1 }
 0x1b4   :  { %2110 = vst [vmem:[#allocation46_spill] sm:$0xff] %v1854_v6  ;;  %2111 = vst [vmem:[#allocation47_spill] sm:$0xff] %v1859_v11  ;;  %v1880_v44 = vrot.slane %v754_v47, %v767_v17 }
 0x1b5   :  { %v623_v0 = vpop.f32.mrf.mxu1 }
 0x1b6   :  { %732 = vxpose.xlu1.b32.cont [11/16] (narrow) %v1819_v16, 8  ;;  %v1868_v19 = vadd.f32 %v623_v0, %v1408_v38  ;;  %v764_v38 = vrot.slane %v754_v47, %v1399_v36  ;;  %v1045_v0 = vunpack.c.0.s8 %v1044_v4  ;;  %vm775_vm4 = vcmp.eq.s32.totalorder %v1396_v35, %v1880_v44 }
 0x1b7   :  { %700 = vxpose.xlu0.b32.cont [11/16] (narrow) %v1823_v1, 8 }
 0x1b8   :  { %2112 = vst [vmem:[#allocation48_spill] sm:$0xff] %v1868_v19  ;;  %vm1888_vm2 = vcmp.eq.s32.totalorder %v1396_v35, %v764_v38  ;;  %v1048_v8 = vsub.s32 %v1045_v0, %v1396_v35  ;;  %v2119_v35 = vld [vmem:[#allocation16_spill] sm:$0xff] }
 0x1b9   :  { %v496_v44 = vadd.f32 %v2119_v35, %v1507_v51  ;;  %v2147_v35 = vld [vmem:[#allocation30_spill] sm:$0xff] }
 0x1ba   :  { %733 = vxpose.xlu1.b32.cont [12/16] (narrow) %v1828_v50, 8 }
 0x1bb   :  { %701 = vxpose.xlu0.b32.cont [12/16] (narrow) %v1832_v14, 8 }
 0x1be   :  { %734 = vxpose.xlu1.b32.cont [13/16] (narrow) %v1839_v58, 8 }
 0x1bf   :  { %702 = vxpose.xlu0.b32.cont [13/16] (narrow) %v1843_v34, 8 }
 0x1c2   :  { %735 = vxpose.xlu1.b32.cont [14/16] (narrow) %v1848_v3, 8 }
 0x1c3   :  { %703 = vxpose.xlu0.b32.cont [14/16] (narrow) %v1852_v57, 8 }
 0x1c6   :  { %736 = vxpose.xlu1.b32.cont [15/16] (narrow) %v1859_v11, 8 }
 0x1c7   :  { %704 = vxpose.xlu0.b32.cont [15/16] (narrow) %v1863_v12, 8 }
 0x1ca   :  { %737 = vxpose.xlu1.b32.end [16/16] (narrow) %v1868_v19, 8  ;;  %v1873_v27 = vpop.trf.xlu1 }
 0x1cb   :  { %705 = vxpose.xlu0.b32.end [16/16] (narrow) %v528_v24, 8  ;;  %v792_v24 = vrot.slane %v1873_v27, %v1399_v36  ;;  %v1041_v4 = vcombine.low %v1875_v26, %v1873_v27 }
 0x1cd   :  { %v802_v22 = vsel %vm1888_vm2, %v792_v24, -1e+30  ;;  %v1049_v20 = vrot.slane %v1041_v4, %v1048_v8  ;;  %v810_v24 = vld [vmem:[%s2057_s6] sm:$0xff] }
 0x1ce   :  { %v805_v28 = vmax.f32 %v801_v37, %v802_v22 }
 0x1e8   :  { %1154 = vset.pattern.permute.xlu1 %v1284_v55 }
 0x1f4   :  { %1155 = vset.pattern.permute.xlu0 %v1284_v55 }
 0x20a   :  { %v1895_v47 = vpop.trf.xlu1 }
 0x20b   :  { %v800_v39 = vrot.slane %v1895_v47, %v1399_v36  ;;  %v1900_v17 = vpop.trf.xlu0 }
 0x20c   :  { %2116 = vst [vmem:[#allocation49_spill] sm:$0xff] %v1900_v17  ;;  %v796_v38 = vrot.slane %v1900_v17, %v1399_v36  ;;  %v1042_v0 = vcombine.low %v1900_v17, %v1895_v47 }
 0x20d   :  { %v804_v40 = vsel %vm776_vm3, %v800_v39, -1e+30 }
 0x20e   :  { %v1056_v10 = vrot.slane %v1042_v0, %v1048_v8  ;;  %v803_v16 = vsel %vm775_vm4, %v796_v38, -1e+30 }
 0x20f   :  { %v806_v50 = vmax.f32 %v803_v16, %v804_v40 }
 0x210   :  { %v1057_v5 = vcombine.high %v1049_v20, %v1056_v10 }
 0x211   :  { %v807_v58 = vmax.f32 %v805_v28, %v806_v50 }
 0x212   :  { %v1064_v3 = vrot.slane %v1057_v5, %v1048_v8  ;;  %v2118_v5 = vmov 0.0  }
 0x213   :  { %808 = vmax.xlane.f32.xlu0 %v807_v58  ;;  %v1105_v37 = vsel %vm773_vm1, 1.0, %v2118_v5  ;;  %v1106_v22 = vsel %vm1888_vm2, 1.0, %v2118_v5  ;;  %v1108_v30 = vsel %vm776_vm3, 1.0, %v2118_v5 }
 0x214   :  { %1070 = vst.msk [vmem:[#allocation8] sm:$0xf] %vm1068_vm5, %v1064_v3 }
 0x29c   :  { %v809_v4 = vpop.xlane.xlu0 %808 }
 0x29d   :  { %v811_v39 = vmax.f32 %v810_v24, %v809_v4 }
 0x29f   :  { %v812_v0 = vsub.f32 %v810_v24, %v811_v39  ;;  %881 = vst.msk [vmem:[%s2057_s6] sm:$0xff] %vm67_vm0, %v811_v39  ;;  %817 = vperm.xlu1 %1154, %v811_v39   ;;  %s1285_s6 = smov [#allocation8]  }
 0x2a0   :  { %s1077_s20 = sshll.u32 %s1285_s6, 4  ;;  %s1078_s20 = int_to_ptr.vmem [resolvable:$true] %s1077_s20 }
 0x2a1   :  { %v813_v10 = vmul.f32 1.442695, %v812_v0  ;;  %s1226_s21 = scalar_lea.vmem %s1078_s20, 64  ;;  %p1231_p2 = scmp.lt.s32.totalorder %s1078_s20, %s1078_s20 }
 0x2a2   :  { %p1227_p1 = scmp.ne.s32.totalorder %s1078_s20, %s1226_s21  ;;  %p1232_p3 = scmp.lt.s32.totalorder %s1226_s21, %s1226_s21 }
 0x2a3   :  { %1156 = vpow2.f32 %v813_v10 }
 0x2a4   :  { %p1233_p4 = por %p1232_p3, %p1231_p2 }
 0x2a6   :  { %p1234_p5 = pnand %p1233_p4, %p1227_p1 }
 0x2b0   :  { %v1157_v28 = vpop.eup %1156 }
 0x2b1   :  { %886 = vperm.xlu1 %1154, %v1157_v28  }
 0x31a   :  { %v818_v40 = vpop.permute.xlu1 %817 }
 0x31b   :  { %v820_v20 = vmul.f32 %v1105_v37, %v818_v40  ;;  %v821_v16 = vmul.f32 %v1106_v22, %v818_v40  ;;  %v823_v50 = vmul.f32 %v1108_v30, %v818_v40 }
 0x31d   :  { %v824_v58 = vrot.slane %v820_v20, 4  ;;  %v830_v3 = vrot.slane %v821_v16, 4  ;;  %v842_v8 = vrot.slane %v823_v50, 4 }
 0x31f   :  { %v825_v38 = vadd.f32 %v824_v58, %v820_v20  ;;  %v831_v55 = vadd.f32 %v830_v3, %v821_v16  ;;  %v843_v24 = vadd.f32 %v842_v8, %v823_v50 }
 0x321   :  { %v826_v46 = vrot.slane %v825_v38, 2  ;;  %v832_v4 = vrot.slane %v831_v55, 2  ;;  %v844_v39 = vrot.slane %v843_v24, 2 }
 0x323   :  { %v827_v0 = vadd.f32 %v826_v46, %v825_v38  ;;  %v833_v29 = vadd.f32 %v832_v4, %v831_v55  ;;  %v845_v10 = vadd.f32 %v844_v39, %v843_v24  ;;  %v2130_v46 = vld [vmem:[#allocation34_spill] sm:$0xff] }
 0x324   :  { %v598_v4 = vadd.f32 %v2130_v46, %v1507_v51  ;;  %v2131_v39 = vld [vmem:[#allocation42_spill] sm:$0xff] }
 0x325   :  { %v828_v28 = vrot.slane %v827_v0, 1  ;;  %v834_v25 = vrot.slane %v833_v29, 1  ;;  %v846_v61 = vrot.slane %v845_v10, 1 }
 0x327   :  { %v829_v11 = vadd.f32 %v828_v28, %v827_v0  ;;  %v835_v17 = vadd.f32 %v834_v25, %v833_v29  ;;  %v847_v43 = vadd.f32 %v846_v61, %v845_v10  ;;  %v2132_v0 = vld [vmem:[#allocation31_spill] sm:$0xff]  ;;  %v2133_v10 = vld [vmem:[#allocation41_spill] sm:$0xff]  ;;  %v2134_v28 = vld [vmem:[#allocation28_spill] sm:$0xff] }
 0x328   :  { %v592_v29 = vadd.f32 %v2132_v0, %v1507_v51  ;;  %v586_v61 = vadd.f32 %v2134_v28, %v1507_v51 }
 0x329   :  { %v848_v19 = vsub.f32 %v1875_v26, %v829_v11  ;;  %v849_v6 = vsub.f32 %v1873_v27, %v835_v17  ;;  %v851_v20 = vsub.f32 %v1895_v47, %v847_v43  ;;  %v526_v43 = vadd.f32 %v1498_v31, %v1507_v51 }
 0x32a   :  { %v514_v27 = vadd.f32 %v1485_v15, %v1507_v51  ;;  %v1951_v47 = vsel %vm775_vm4, 1.0, %v2118_v5  ;;  %v508_v31 = vadd.f32 %v1471_v7, %v1507_v51  ;;  %v502_v15 = vadd.f32 %v1455_v62, %v1507_v51  ;;  %v2120_v7 = vld [vmem:[#allocation15_spill] sm:$0xff] }
 0x32b   :  { %v852_v16 = vmul.f32 1.442695, %v848_v19  ;;  %v854_v50 = vmul.f32 1.442695, %v849_v6  ;;  %v858_v58 = vmul.f32 1.442695, %v851_v20  ;;  %v520_v19 = vadd.f32 %v1492_v23, %v1507_v51 }
 0x32c   :  { %v822_v23 = vmul.f32 %v1951_v47, %v818_v40  ;;  %v2129_v40 = vld [vmem:[#allocation44_spill] sm:$0xff]  ;;  %v2135_v20 = vld [vmem:[#allocation39_spill] sm:$0xff] }
 0x32d   :  { %1158 = vpow2.f32 %v852_v16  ;;  %v2136_v16 = vld [vmem:[#allocation25_spill] sm:$0xff] }
 0x32e   :  { %1160 = vpow2.f32 %v854_v50  ;;  %v580_v50 = vadd.f32 %v2136_v16, %v1507_v51 }
 0x32f   :  { %1162 = vpow2.f32 %v858_v58  ;;  %v2137_v58 = vld [vmem:[#allocation38_spill] sm:$0xff] }
 0x33a   :  { %v1159_v3 = vpop.eup %1158 }
 0x33b   :  { %v863_v8 = vrot.slane %v1159_v3, %v1399_v36  ;;  %v1161_v38 = vpop.eup %1160  ;;  %v2138_v3 = vld [vmem:[#allocation24_spill] sm:$0xff] }
 0x33c   :  { %v1163_v55 = vpop.eup %1162  ;;  %v867_v25 = vrot.slane %v1161_v38, %v1399_v36  ;;  %v2139_v38 = vld [vmem:[#allocation36_spill] sm:$0xff] }
 0x33d   :  { %v876_v24 = vmul.f32 %v1105_v37, %v863_v8  ;;  %v875_v26 = vrot.slane %v1163_v55, %v1399_v36  ;;  %v2127_v37 = vld [vmem:[#allocation45_spill] sm:$0xff]  ;;  %v574_v8 = vadd.f32 %v2138_v3, %v1507_v51  ;;  %v2140_v55 = vld [vmem:[#allocation23_spill] sm:$0xff] }
 0x33e   :  { %v877_v11 = vmul.f32 %v1106_v22, %v867_v25  ;;  %v568_v25 = vadd.f32 %v2140_v55, %v1507_v51 }
 0x33f   :  { %v879_v6 = vmul.f32 %v1108_v30, %v875_v26  ;;  %v2142_v26 = vld [vmem:[#allocation22_spill] sm:$0xff] }
 0x340   :  { %955 = vmatprep.mubr.f32.mxu1 %v877_v11  ;;  %v562_v11 = vadd.f32 %v2142_v26, %v1507_v51 }
 0x341   :  { %956 = vmatmul.mubr.f32.vlgmr.msra.gmra.mxu1 %v876_v24  ;;  %v2141_v24 = vld [vmem:[#allocation35_spill] sm:$0xff] }
 0x342   :  { %963 = vmatpush1.msra.mxu1 %v526_v43  ;;  %1026 = vmatprep.mubr.f32.mxu1 %v879_v6  ;;  %v2143_v43 = vld [vmem:[#allocation33_spill] sm:$0xff] }
 0x343   :  { %964 = vmatprep.subr.mxu1 %v1863_v12  ;;  %v836_v12 = vrot.slane %v822_v23, 4  ;;  %v2144_v6 = vld [vmem:[#allocation21_spill] sm:$0xff] }
 0x344   :  { %965 = vmatpush1.msra.mxu1 %v520_v19  ;;  %v556_v19 = vadd.f32 %v2144_v6, %v1507_v51 }
 0x345   :  { %966 = vmatprep.subr.mxu1 %v1852_v57  ;;  %v490_v57 = vadd.f32 %v2120_v7, %v1507_v51  ;;  %v837_v62 = vadd.f32 %v836_v12, %v822_v23  ;;  %v2146_v23 = vld [vmem:[#allocation20_spill] sm:$0xff]  ;;  %v2149_v7 = vld [vmem:[#allocation29_spill] sm:$0xff] }
 0x346   :  { %967 = vmatpush1.msra.mxu1 %v514_v27  ;;  %v2145_v27 = vld [vmem:[#allocation32_spill] sm:$0xff] }
 0x347   :  { %968 = vmatprep.subr.mxu1 %v1843_v34  ;;  %v484_v34 = vadd.f32 %v1791_v41, %v1507_v51  ;;  %v838_v17 = vrot.slane %v837_v62, 2  ;;  %v466_v41 = vadd.f32 %v1736_v56, %v1507_v51 }
 0x348   :  { %969 = vmatpush1.msra.mxu1 %v508_v31 }
 0x349   :  { %970 = vmatprep.subr.mxu1 %v1832_v14  ;;  %v478_v14 = vadd.f32 %v1772_v18, %v1507_v51  ;;  %v839_v18 = vadd.f32 %v838_v17, %v837_v62 }
 0x34a   :  { %971 = vmatpush1.msra.mxu1 %v502_v15  ;;  %v550_v15 = vadd.f32 %v2146_v23, %v1507_v51 }
 0x34b   :  { %972 = vmatprep.subr.mxu1 %v1823_v1  ;;  %v472_v1 = vadd.f32 %v1753_v9, %v1507_v51  ;;  %v454_v9 = vadd.f32 %v1698_v60, %v1507_v51  ;;  %v840_v56 = vrot.slane %v839_v18, 1 }
 0x34c   :  { %973 = vmatpush1.msra.mxu1 %v496_v44  ;;  %v2148_v44 = vld [vmem:[#allocation19_spill] sm:$0xff] }
 0x34d   :  { %974 = vmatprep.subr.mxu1 %v1812_v42  ;;  %v841_v60 = vadd.f32 %v840_v56, %v839_v18  ;;  %v544_v12 = vadd.f32 %v2148_v44, %v1507_v51 }
 0x34e   :  { %975 = vmatpush1.msra.mxu1 %v490_v57 }
 0x34f   :  { %976 = vmatprep.subr.mxu1 %v1802_v59  ;;  %v460_v59 = vadd.f32 %v1717_v21, %v1507_v51  ;;  %v442_v21 = vadd.f32 %v1662_v48, %v1507_v51  ;;  %v2124_v48 = vld [vmem:[#allocation49_spill] sm:$0xff] }
 0x350   :  { %977 = vmatpush1.msra.mxu1 %v484_v34  ;;  %v850_v42 = vsub.f32 %v2124_v48, %v841_v60  ;;  %v2150_v34 = vld [vmem:[#allocation18_spill] sm:$0xff] }
 0x351   :  { %978 = vmatprep.subr.mxu1 %v1786_v2  ;;  %v538_v62 = vadd.f32 %v2150_v34, %v1507_v51 }
 0x352   :  { %979 = vmatpush1.msra.mxu1 %v478_v14  ;;  %v856_v30 = vmul.f32 1.442695, %v850_v42  ;;  %v2151_v14 = vld [vmem:[#allocation27_spill] sm:$0xff] }
 0x353   :  { %980 = vmatprep.subr.mxu1 %v1769_v33  ;;  %v448_v33 = vadd.f32 %v1677_v53, %v1507_v51 }
 0x354   :  { %981 = vmatpush1.msra.mxu1 %v472_v1  ;;  %1164 = vpow2.f32 %v856_v30  ;;  %v2152_v1 = vld [vmem:[#allocation17_spill] sm:$0xff] }
 0x355   :  { %982 = vmatprep.subr.mxu1 %v1750_v63  ;;  %v2122_v63 = vld [vmem:[#allocation48_spill] sm:$0xff]  ;;  %v532_v17 = vadd.f32 %v2152_v1, %v1507_v51 }
 0x356   :  { %983 = vmatpush1.msra.mxu1 %v466_v41  ;;  %v2153_v41 = vld [vmem:[#allocation26_spill] sm:$0xff] }
 0x357   :  { %984 = vmatprep.subr.mxu1 %v1733_v52  ;;  %v436_v52 = vadd.f32 %v1650_v45, %v1507_v51  ;;  %v2126_v45 = vld [vmem:[#allocation40_spill] sm:$0xff] }
 0x358   :  { %985 = vmatpush1.msra.mxu1 %v460_v59  ;;  %v610_v5 = vadd.f32 %v2126_v45, %v1507_v51 }
 0x359   :  { %986 = vmatprep.subr.mxu1 %v1714_v32  ;;  %v2121_v32 = vld [vmem:[#allocation46_spill] sm:$0xff] }
 0x35a   :  { %987 = vmatpush1.msra.mxu1 %v454_v9  ;;  %v622_v53 = vadd.f32 %v2121_v32, %v1507_v51 }
 0x35b   :  { %988 = vmatprep.subr.mxu1 %v1691_v49  ;;  %v2123_v49 = vld [vmem:[#allocation43_spill] sm:$0xff] }
 0x35c   :  { %989 = vmatpush1.msra.mxu1 %v448_v33  ;;  %v616_v2 = vadd.f32 %v2123_v49, %v1507_v51 }
 0x35d   :  { %990 = vmatprep.subr.mxu1 %v1675_v13  ;;  %v2125_v13 = vld [vmem:[#allocation47_spill] sm:$0xff] }
 0x35e   :  { %991 = vmatpush1.msra.mxu1 %v442_v21 }
 0x35f   :  { %992 = vmatprep.subr.mxu1 %v1660_v54  ;;  %v2128_v54 = vld [vmem:[#allocation37_spill] sm:$0xff] }
 0x360   :  { %993 = vmatpush1.msra.mxu1 %v436_v52  ;;  %v604_v22 = vadd.f32 %v2128_v54, %v1507_v51 }
 0x361   :  { %994 = vmatprep.subr.mxu1 %v2122_v63  ;;  %v1165_v31 = vpop.eup %1164 }
 0x362   :  { %995 = vmatpush2.msra.mxu1 %v622_v53  ;;  %v871_v57 = vrot.slane %v1165_v31, %v1399_v36 }
 0x363   :  { %996 = vmatprep.subr.mxu1 %v2125_v13 }
 0x364   :  { %997 = vmatpush2.msra.mxu1 %v616_v2  ;;  %v878_v59 = vmul.f32 %v1951_v47, %v871_v57 }
 0x365   :  { %998 = vmatprep.subr.mxu1 %v2127_v37 }
 0x366   :  { %999 = vmatpush2.msra.mxu1 %v610_v5 }
 0x367   :  { %1000 = vmatprep.subr.mxu1 %v2129_v40 }
 0x368   :  { %1001 = vmatpush2.msra.mxu1 %v604_v22 }
 0x369   :  { %1002 = vmatprep.subr.mxu1 %v2131_v39 }
 0x36a   :  { %1003 = vmatpush2.msra.mxu1 %v598_v4 }
 0x36b   :  { %1004 = vmatprep.subr.mxu1 %v2133_v10 }
 0x36c   :  { %1005 = vmatpush2.msra.mxu1 %v592_v29 }
 0x36d   :  { %1006 = vmatprep.subr.mxu1 %v2135_v20 }
 0x36e   :  { %1007 = vmatpush2.msra.mxu1 %v586_v61 }
 0x36f   :  { %1008 = vmatprep.subr.mxu1 %v2137_v58 }
 0x370   :  { %1009 = vmatpush2.msra.mxu1 %v580_v50 }
 0x371   :  { %1010 = vmatprep.subr.mxu1 %v2139_v38 }
 0x372   :  { %1011 = vmatpush2.msra.mxu1 %v574_v8 }
 0x373   :  { %1012 = vmatprep.subr.mxu1 %v2141_v24 }
 0x374   :  { %1013 = vmatpush2.msra.mxu1 %v568_v25 }
 0x375   :  { %1014 = vmatprep.subr.mxu1 %v2143_v43 }
 0x376   :  { %1015 = vmatpush2.msra.mxu1 %v562_v11 }
 0x377   :  { %1016 = vmatprep.subr.mxu1 %v2145_v27 }
 0x378   :  { %1017 = vmatpush2.msra.mxu1 %v556_v19 }
 0x379   :  { %1018 = vmatprep.subr.mxu1 %v2147_v35 }
 0x37a   :  { %1019 = vmatpush2.msra.mxu1 %v550_v15 }
 0x37b   :  { %1020 = vmatprep.subr.mxu1 %v2149_v7 }
 0x37c   :  { %1021 = vmatpush2.msra.mxu1 %v544_v12 }
 0x37d   :  { %1022 = vmatprep.subr.mxu1 %v2151_v14 }
 0x37e   :  { %1023 = vmatpush2.msra.mxu1 %v538_v62 }
 0x37f   :  { %1024 = vmatprep.subr.mxu1 %v2153_v41 }
 0x380   :  { %1025 = vmatpush2.msra.mxu1 %v532_v17 }
 0x381   :  { %1027 = vmatmul.mubr.f32.vlgmr.msra.gmra.mxu1 %v878_v59 }
 0x382   :  { %1237 = shalt.err (!%p1234_p5)
}
 0x383   :  { %1080 = dma.vmem_to_hbm [thread:$0]  %s1078_s20, 64, %s2055_s4, [#allocation4]   ;;  %v887_v51 = vpop.permute.xlu1 %886 }
 0x384   :  { %v889_v9 = vmul.f32 0.0, %v887_v51  ;;  %s1286_s24 = smov [#allocation9]  }
 0x385   :  { %s1087_s25 = sshll.u32 %s1286_s24, 4  ;;  %s1088_s25 = int_to_ptr.vmem [resolvable:$true] %s1087_s25 }
 0x386   :  { %s1246_s26 = scalar_lea.vmem %s1088_s25, 256  ;;  %p1251_p7 = scmp.lt.s32.totalorder %s1088_s25, %s1088_s25 }
 0x387   :  { %p1247_p6 = scmp.ne.s32.totalorder %s1088_s25, %s1246_s26  ;;  %p1252_p8 = scmp.lt.s32.totalorder %s1246_s26, %s1246_s26 }
 0x389   :  { %p1253_p9 = por %p1252_p8, %p1251_p7 }
 0x38b   :  { %p1254_p10 = pnand %p1253_p9, %p1247_p6 }
 0x401   :  { %v957_v36 = vpop.f32.mrf.mxu1 }
 0x403   :  { %v959_v18 = vpop.f32.mrf.mxu1 }
 0x441   :  { %v1028_v47 = vpop.f32.mrf.mxu1 }
 0x442   :  { %v1029_v33 = vadd.f32 %v1028_v47, %v957_v36 }
 0x443   :  { %v1030_v56 = vpop.f32.mrf.mxu1 }
 0x444   :  { %v1033_v21 = vadd.f32 %v1029_v33, %v889_v9  ;;  %v1031_v52 = vadd.f32 %v1030_v56, %v959_v18 }
 0x446   :  { %1035 = vst [vmem:[#allocation9] sm:$0xff] %v1033_v21  ;;  %v1034_v60 = vadd.f32 %v1031_v52, %v889_v9 }
 0x448   :  { %1036 = vst [vmem:[#allocation9 + $0x8] sm:$0xff] %v1034_v60 }
 0x449   :  { %1257 = shalt.err (!%p1254_p10)
}
 0x44a   :  { %1090 = dma.vmem_to_hbm [thread:$0]  %s1088_s25, 256, %s2056_s5, [#allocation10]  }
 0x44b   :  { %1270 = dma.done.wait [#allocation4], 64  }
 0x44c   :  { %1271 = vsyncadd [#allocation4], 4294967232 }
 0x44d   :  { %1272 = dma.done.wait [#allocation10], 256  }
 0x44e   :  { %1273 = vsyncadd [#allocation10], 4294967040 }
 0x44f   :  { %1101 = vsyncpa [#allocation3], 1 }
 0x450   :  { %1102 = vsyncpa [#allocation6], 1 }
 0x451   :  { %1103 = vsyncpa [#allocation4], 1 }
 0x452   :  { %1104 = vsyncpa [#allocation10], 1 }

</bundles_post_ra>
